<compile_context>
chip_gen: v7x
topology: tpu7x:2x2x1
jax: 0.10.0
libtpu: 0.0.40
codegen_flags: <defaults>
</compile_context>

<pallas_src>
import functools
import math

import jax
import jax.numpy as jnp
import numpy as np
from jax.experimental import pallas as pl
from jax.experimental.pallas import tpu as pltpu

_BN_EPS = 1e-5
_PAD = 128                       # left halo of the conv line buffer (aligned stores)
_SCRATCH_W = _PAD + 256 + 128    # 17-lane right halo needed; rounded up


# ---------------------------------------------------------------------------
# Packed-parameter layout (shared by prep and kernel; all offsets are static)
# ---------------------------------------------------------------------------
def _build_layout(batch):
    width = max(36, 4 * batch)
    layout = {}
    row = 0

    def add(name, shape):
        nonlocal row
        layout[name] = (row, shape)
        row += shape[0]

    add("w1", (9, 1)); add("b1", (1, 1))
    add("w2", (9, 4)); add("b2", (4, 1))
    add("W3", (8, 36)); add("b3", (8, 1))
    add("b4", (16, 1))
    add("W5", (16, 16)); add("b5", (16, 1))
    add("Wfc", (16, 16)); add("bfc", (16, 1))
    for i in range(4):
        add(f"Wm{i}", (16, 16)); add(f"bm{i}", (16, 1))
    add("Wlast", (3, 16)); add("blast", (3, 1))
    add("P3f", (16 * batch, 4 * batch))
    add("P4f", (4 * batch, batch))
    return layout, row, width


# ---------------------------------------------------------------------------
# The single fused kernel
# ---------------------------------------------------------------------------
def _img_only_kernel(x_ref, p1_ref, p2_ref, mk_ref, w4_ref, pk_ref, out_ref, sb,
                     *, batch, layout):
    f32 = jnp.float32
    B = batch

    def pkv(name):
        r, (nr, nc) = layout[name]
        return pk_ref[r:r + nr, 0:nc]

    # Zero the shared line buffer once: halo / never-written lanes must be
    # finite; every stale read is multiplied by a 0 mask afterwards.
    sb[...] = jnp.zeros(sb.shape, sb.dtype)

    # ---------------- layer1: Conv(1->1, 3x3) on (B, 16*16), VPU MACs -------
    m1 = mk_ref[0:9, 0:256]
    w1 = pkv("w1")
    b1 = pkv("b1")
    sb[0:B, _PAD:_PAD + 256] = x_ref[...]
    acc = None
    for t in range(9):
        s = (t // 3 - 1) * 16 + (t % 3 - 1)
        tap = sb[0:B, _PAD + s:_PAD + s + 256] * m1[t:t + 1, :]
        term = w1[t:t + 1, 0:1] * tap
        acc = term if acc is None else acc + term
    h = jnp.maximum(acc + b1, 0.0)                                    # (B, 256)

    # ---------------- pool1: per-image AvgPool2d(2), 256 -> 64 --------------
    h = jnp.dot(h, p1_ref[...].astype(f32), preferred_element_type=f32)  # (B, 64)

    # ---------------- layer2: Conv(1->4, 3x3) on (B, 8*8), VPU MACs ---------
    m2 = mk_ref[9:18, 0:64]
    w2 = pkv("w2")
    b2 = pkv("b2")
    sb[0:B, _PAD:_PAD + 64] = h
    taps = []
    for t in range(9):
        s = (t // 3 - 1) * 8 + (t % 3 - 1)
        taps.append(sb[0:B, _PAD + s:_PAD + s + 64] * m2[t:t + 1, :])
    outs = []
    for o in range(4):
        a = taps[0] * w2[0:1, o:o + 1]
        for t in range(1, 9):
            a = a + taps[t] * w2[t:t + 1, o:o + 1]
        outs.append(jnp.maximum(a + b2[o:o + 1, 0:1], 0.0))
    h = jnp.concatenate(outs, axis=0)                                 # (4B, 64), row = c*B + b

    # ---------------- pool2: per-image AvgPool2d(2), 64 -> 16 ---------------
    h = jnp.dot(h, p2_ref[...].astype(f32), preferred_element_type=f32)  # (4B, 16)

    # ---- transition to flat channel-major (C, B*H*W) for the MXU convs -----
    for c in range(4):
        for b in range(B):
            sb[c:c + 1, _PAD + b * 16:_PAD + b * 16 + 16] = h[c * B + b:c * B + b + 1, :]

    # ---------------- layer3: Conv(4->8, 3x3), one im2col MXU dot -----------
    n3 = 16 * B
    m3 = mk_ref[18:27, 0:n3]
    taps = []
    for t in range(9):
        s = (t // 3 - 1) * 4 + (t % 3 - 1)
        taps.append(sb[0:4, _PAD + s:_PAD + s + n3] * m3[t:t + 1, :])
    tapm = jnp.concatenate(taps, axis=0)                              # (36, 16B)
    h = jnp.maximum(jnp.dot(pkv("W3"), tapm, preferred_element_type=f32)
                    + pkv("b3"), 0.0)                                 # (8, 16B)

    # ---------------- pool3 (flat, tiny block-diagonal matrix) --------------
    h = jnp.dot(h, pkv("P3f"), preferred_element_type=f32)            # (8, 4B)

    # ---------------- layer4: Conv(8->16, 3x3), one im2col MXU dot ----------
    n4 = 4 * B
    m4 = mk_ref[27:36, 0:n4]
    sb[0:8, _PAD:_PAD + n4] = h
    taps = []
    for t in range(9):
        s = (t // 3 - 1) * 2 + (t % 3 - 1)
        taps.append(sb[0:8, _PAD + s:_PAD + s + n4] * m4[t:t + 1, :])
    tapm = jnp.concatenate(taps, axis=0)                              # (72, 4B)
    h = jnp.maximum(jnp.dot(w4_ref[...], tapm, preferred_element_type=f32)
                    + pkv("b4"), 0.0)                                 # (16, 4B)

    # ---------------- pool4 -> (16, B); layer5 == centre-tap linear ---------
    h = jnp.dot(h, pkv("P4f"), preferred_element_type=f32)            # (16, B)
    h = jnp.maximum(jnp.dot(pkv("W5"), h, preferred_element_type=f32)
                    + pkv("b5"), 0.0)
    # AdaptiveAvgPool2d(1) on a 1x1 map is the identity; view(B,-1) == columns.
    h = jnp.dot(pkv("Wfc"), h, preferred_element_type=f32) + pkv("bfc")

    # ---------------- MLP head + folded convert_rb_to_rgb -------------------
    for i in range(4):
        h = jnp.maximum(jnp.dot(pkv(f"Wm{i}"), h, preferred_element_type=f32)
                        + pkv(f"bm{i}"), 0.0)
    out_ref[...] = (jnp.dot(pkv("Wlast"), h, preferred_element_type=f32)
                    + pkv("blast"))                                   # (3, B)


# ---------------------------------------------------------------------------
# Host-side constant builders
# ---------------------------------------------------------------------------
def _pool_matrix_image(h, w):
    ho, wo = h // 2, w // 2
    m = np.zeros((h * w, ho * wo), np.float32)
    for y in range(h):
        for x in range(w):
            m[y * w + x, (y // 2) * wo + (x // 2)] = 0.25
    return m


def _pool_matrix_flat(h, w, batch):
    per = _pool_matrix_image(h, w)
    ho, wo = h // 2, w // 2
    m = np.zeros((batch * h * w, batch * ho * wo), np.float32)
    for b in range(batch):
        m[b * h * w:(b + 1) * h * w, b * ho * wo:(b + 1) * ho * wo] = per
    return m


def _masks_3x3(h, w, nrep):
    m = np.zeros((9, nrep * h * w), np.float32)
    for t in range(9):
        dy, dx = t // 3 - 1, t % 3 - 1
        for y in range(h):
            for x in range(w):
                if 0 <= y + dy < h and 0 <= x + dx < w:
                    for b in range(nrep):
                        m[t, b * h * w + y * w + x] = 1.0
    return m


def _mask_pack(batch):
    width = max(256, 16 * batch)
    mk = np.zeros((36, width), np.float32)
    mk[0:9, 0:256] = _masks_3x3(16, 16, 1)          # layer1 (per-image 16x16)
    mk[9:18, 0:64] = _masks_3x3(8, 8, 1)            # layer2 (per-image 8x8)
    mk[18:27, 0:16 * batch] = _masks_3x3(4, 4, batch)   # layer3 (flat, batch-tiled)
    mk[27:36, 0:4 * batch] = _masks_3x3(2, 2, batch)    # layer4 (flat, batch-tiled)
    return mk


# ---------------------------------------------------------------------------
# Parameter construction (mirrors ImgOnly.init_params) + kernel-ready packing
# ---------------------------------------------------------------------------
def init_params(key, batch=2, in_channels=1, feature_dim=16, out_features=2):
    assert in_channels == 1 and feature_dim == 16 and out_features == 2, \
        "packed-kernel build is specialised to the module defaults"
    a = 0.01
    gain = math.sqrt(2.0 / (1.0 + a * a))
    keys = jax.random.split(key, 12)

    def conv_layer(k, cin, cout, bn):
        # kaiming_normal_(a=0.01, fan_in), bias = 0
        std = gain / math.sqrt(cin * 9)
        w = std * jax.random.normal(k, (cout, cin, 3, 3), jnp.float32)
        b = jnp.zeros((cout,), jnp.float32)
        if bn:  # fold eval-mode BN (gamma=1, beta=0, mean=0, var=1)
            s = 1.0 / math.sqrt(1.0 + _BN_EPS)
            w, b = w * s, b * s
        taps = jnp.transpose(w, (2, 3, 0, 1)).reshape(9, cout, cin)   # tap-major
        return taps, b

    def linear(k, fin, fout):
        # kaiming_uniform_(a=0.01, fan_in), bias = 0; PyTorch layout (out, in)
        bound = gain * math.sqrt(3.0 / fin)
        w = jax.random.uniform(k, (fout, fin), jnp.float32, -bound, bound)
        return w, jnp.zeros((fout,), jnp.float32)

    p = {}
    p["w1"], p["b1"] = conv_layer(keys[0], 1, 1, True)       # layer1
    p["w2"], p["b2"] = conv_layer(keys[1], 1, 4, False)      # layer2 (no norm)
    p["w3"], p["b3"] = conv_layer(keys[2], 4, 8, True)       # layer3
    p["w4"], p["b4"] = conv_layer(keys[3], 8, 16, True)      # layer4
    p["w5"], p["b5"] = conv_layer(keys[4], 16, 16, True)     # layer5
    p["wfc"], p["bfc"] = linear(keys[5], 16, feature_dim)
    wh, bh = [], []
    for i in range(4):
        w, b = linear(keys[6 + i], feature_dim, feature_dim)
        wh.append(w); bh.append(b)
    p["wmh"] = jnp.stack(wh); p["bmh"] = jnp.stack(bh)
    p["wml"], p["bml"] = linear(keys[10], feature_dim, out_features)

    # ---- packed kernel operands ----
    layout, rows, width = _build_layout(batch)
    blocks = {
        "w1": np.asarray(p["w1"])[:, 0, 0].reshape(9, 1),
        "b1": np.asarray(p["b1"]).reshape(1, 1),
        "w2": np.asarray(p["w2"])[:, :, 0],
        "b2": np.asarray(p["b2"]).reshape(4, 1),
        "W3": np.asarray(p["w3"]).transpose(1, 0, 2).reshape(8, 36),
        "b3": np.asarray(p["b3"]).reshape(8, 1),
        "b4": np.asarray(p["b4"]).reshape(16, 1),
        "W5": np.asarray(p["w5"])[4],                          # 1x1 map -> centre tap
        "b5": np.asarray(p["b5"]).reshape(16, 1),
        "Wfc": np.asarray(p["wfc"]),
        "bfc": np.asarray(p["bfc"]).reshape(16, 1),
        # final MLP linear with convert_rb_to_rgb folded in
        "Wlast": np.stack([np.asarray(p["wml"])[0],
                           np.zeros((16,), np.float32),
                           np.asarray(p["wml"])[1]], axis=0),
        "blast": np.array([float(p["bml"][0]), 1.0, float(p["bml"][1])],
                          np.float32).reshape(3, 1),
        "P3f": _pool_matrix_flat(4, 4, batch),
        "P4f": _pool_matrix_flat(2, 2, batch),
    }
    for i in range(4):
        blocks[f"Wm{i}"] = np.asarray(p["wmh"][i])
        blocks[f"bm{i}"] = np.asarray(p["bmh"][i]).reshape(16, 1)

    pk = np.zeros((rows, width), np.float32)
    for name, arr in blocks.items():
        r, shp = layout[name]
        pk[r:r + shp[0], :shp[1]] = np.asarray(arr, np.float32).reshape(shp)
    p["pk"] = jnp.asarray(pk)
    p["W4"] = jnp.asarray(np.asarray(p["w4"]).transpose(1, 0, 2).reshape(16, 72))
    p["P1"] = jnp.asarray(_pool_matrix_image(16, 16), jnp.bfloat16)   # 0.25 exact in bf16
    p["P2"] = jnp.asarray(_pool_matrix_image(8, 8), jnp.bfloat16)
    p["masks"] = jnp.asarray(_mask_pack(batch))
    return p


# ---------------------------------------------------------------------------
# Forward pass: one pallas_call end-to-end
# ---------------------------------------------------------------------------
@jax.jit
def img_only_forward(params, x_nchw):
    b, c, hh, ww = x_nchw.shape
    assert (c, hh, ww) == (1, 16, 16), "kernel is specialised to (B, 1, 16, 16) input"
    layout, _, _ = _build_layout(b)
    x2 = x_nchw.reshape(b, hh * ww).astype(jnp.float32)       # (B, 256): image on lanes

    args = (x2, params["P1"], params["P2"], params["masks"], params["W4"], params["pk"])
    vmem = pl.BlockSpec(memory_space=pltpu.MemorySpace.VMEM)
    flops = 2 * b * (256 * 9 + 256 * 64 + 64 * 9 * 4 + 4 * 64 * 16
                     + 8 * 36 * 16 + 8 * 16 * 4 * b + 16 * 72 * 4 + 16 * 4 * b
                     + 16 * 16 * 7 + 3 * 16)
    bytes_accessed = sum(int(a.size) * a.dtype.itemsize for a in args) + 3 * b * 4

    out = pl.pallas_call(
        functools.partial(_img_only_kernel, batch=b, layout=layout),
        out_shape=jax.ShapeDtypeStruct((3, b), jnp.float32),
        in_specs=[vmem] * len(args),
        out_specs=vmem,
        scratch_shapes=[pltpu.VMEM((max(8, b), _SCRATCH_W), jnp.float32)],
        compiler_params=pltpu.CompilerParams(vmem_limit_bytes=4 * 1024 * 1024),
        cost_estimate=pl.CostEstimate(flops=flops, transcendentals=0,
                                      bytes_accessed=bytes_accessed),
    )(*args)
    return out.T                                              # (B, 3)


# ---------------------------------------------------------------------------
# Pure-JAX reference (consumes the same folded params) for a self-check
# ---------------------------------------------------------------------------
@jax.jit
def _reference_forward(p, x_nchw):
    f32 = jnp.float32
    hp = jax.lax.Precision.HIGHEST
    x = x_nchw.astype(f32)

    def conv3x3(x, taps, bias):                 # x: (B,Cin,H,W); taps: (9,Cout,Cin)
        xp = jnp.pad(x, ((0, 0), (0, 0), (1, 1), (1, 1)))
        hh, ww = x.shape[2], x.shape[3]
        out = 0.0
        for t in range(9):
            ky, kx = t // 3, t % 3
            win = xp[:, :, ky:ky + hh, kx:kx + ww]
            out = out + jnp.einsum("oc,bchw->bohw", taps[t], win, precision=hp)
        return jnp.maximum(out + bias.reshape(1, -1, 1, 1), 0.0)

    def pool(x):
        b, c, hh, ww = x.shape
        return x.reshape(b, c, hh // 2, 2, ww // 2, 2).mean(axis=(3, 5))

    h = conv3x3(x, p["w1"], p["b1"])
    h = conv3x3(pool(h), p["w2"], p["b2"])
    h = conv3x3(pool(h), p["w3"], p["b3"])
    h = conv3x3(pool(h), p["w4"], p["b4"])
    h = conv3x3(pool(h), p["w5"], p["b5"])                   # (B,16,1,1)
    h = h.mean(axis=(2, 3))                                  # AdaptiveAvgPool2d(1)
    v = jnp.dot(h, p["wfc"].T, precision=hp) + p["bfc"]
    for i in range(4):
        v = jnp.maximum(jnp.dot(v, p["wmh"][i].T, precision=hp) + p["bmh"][i], 0.0)
    v = jnp.dot(v, p["wml"].T, precision=hp) + p["bml"]
    rg, bg = v[:, 0:1], v[:, 1:]
    return jnp.concatenate([rg, jnp.ones_like(rg), bg], axis=-1)


if __name__ == "__main__":
    key = jax.random.PRNGKey(0)
    params = init_params(key, batch=2, in_channels=1, feature_dim=16, out_features=2)

    # inputs['input'] in the PyTorch reference is NCHW: (batch=2, channels=1, 16, 16)
    x = jax.random.normal(jax.random.PRNGKey(0), (2, 1, 16, 16), jnp.float32)

    out = img_only_forward(params, x)
    jax.block_until_ready(out)

    assert out.shape == (2, 3), out.shape
    assert bool(jnp.all(jnp.isfinite(out)))
    assert bool(jnp.allclose(out[:, 1], 1.0))            # the injected green channel
    ref = _reference_forward(params, x)
    assert bool(jnp.allclose(out, ref, rtol=5e-3, atol=5e-3)), (out, ref)
    print("KERNEL_OK")
</pallas_src>

<mosaic_0001>
module attributes {stable_mosaic.version = 11 : i64} {
  func.func @_img_only_kernel(%arg0: memref<2x256xf32, #tpu.memory_space<vmem>>, %arg1: memref<256x64xbf16, #tpu.memory_space<vmem>>, %arg2: memref<64x16xbf16, #tpu.memory_space<vmem>>, %arg3: memref<36x256xf32, #tpu.memory_space<vmem>>, %arg4: memref<16x72xf32, #tpu.memory_space<vmem>>, %arg5: memref<293x36xf32, #tpu.memory_space<vmem>>, %arg6: memref<3x2xf32, #tpu.memory_space<vmem>>, %arg7: memref<8x512xf32, #tpu.memory_space<vmem>>) attributes {dimension_semantics = [], scalar_prefetch = 0 : i64, scratch_operands = 1 : i64, tpu.core_type = #tpu.core_type<tc>} {
    %cst = arith.constant 0.000000e+00 : f32
    %0 = vector.broadcast %cst : f32 to vector<8x512xf32>
    %c0 = arith.constant 0 : index
    %c0_0 = arith.constant 0 : index
    %1 = vector.load %arg7[%c0, %c0_0] : memref<8x512xf32, #tpu.memory_space<vmem>>, vector<8x512xf32>
    tpu.vector_store %arg7[%c0, %c0_0], %0 {strides = array<i32>} : memref<8x512xf32, #tpu.memory_space<vmem>>, vector<8x512xf32>,
    %c0_1 = arith.constant 0 : index
    %c0_2 = arith.constant 0 : index
    %2 = vector.load %arg3[%c0_1, %c0_2] : memref<36x256xf32, #tpu.memory_space<vmem>>, vector<9x256xf32>
    %c0_3 = arith.constant 0 : index
    %c0_4 = arith.constant 0 : index
    %3 = vector.load %arg5[%c0_3, %c0_4] : memref<293x36xf32, #tpu.memory_space<vmem>>, vector<9x1xf32>
    %c9 = arith.constant 9 : index
    %c0_5 = arith.constant 0 : index
    %4 = vector.load %arg5[%c9, %c0_5] : memref<293x36xf32, #tpu.memory_space<vmem>>, vector<1x1xf32>
    %c0_6 = arith.constant 0 : index
    %c0_7 = arith.constant 0 : index
    %5 = vector.load %arg0[%c0_6, %c0_7] : memref<2x256xf32, #tpu.memory_space<vmem>>, vector<2x256xf32>
    %c0_8 = arith.constant 0 : index
    %c128 = arith.constant 128 : index
    %6 = vector.load %arg7[%c0_8, %c128] : memref<8x512xf32, #tpu.memory_space<vmem>>, vector<2x256xf32>
    tpu.vector_store %arg7[%c0_8, %c128], %5 {strides = array<i32>} : memref<8x512xf32, #tpu.memory_space<vmem>>, vector<2x256xf32>,
    %c0_9 = arith.constant 0 : index
    %c111 = arith.constant 111 : index
    %7 = vector.load %arg7[%c0_9, %c111] : memref<8x512xf32, #tpu.memory_space<vmem>>, vector<2x256xf32>
    %8 = vector.extract_strided_slice %2 {offsets = [0, 0], sizes = [1, 256], strides = [1, 1]} : vector<9x256xf32> to vector<1x256xf32>
    %9 = vector.broadcast %8 : vector<1x256xf32> to vector<2x256xf32>
    %10 = arith.mulf %7, %9 : vector<2x256xf32>
    %11 = vector.extract_strided_slice %3 {offsets = [0, 0], sizes = [1, 1], strides = [1, 1]} : vector<9x1xf32> to vector<1x1xf32>
    %12 = vector.broadcast %11 : vector<1x1xf32> to vector<2x256xf32>
    %13 = arith.mulf %12, %10 : vector<2x256xf32>
    %c0_10 = arith.constant 0 : index
    %c112 = arith.constant 112 : index
    %14 = vector.load %arg7[%c0_10, %c112] : memref<8x512xf32, #tpu.memory_space<vmem>>, vector<2x256xf32>
    %15 = vector.extract_strided_slice %2 {offsets = [1, 0], sizes = [1, 256], strides = [1, 1]} : vector<9x256xf32> to vector<1x256xf32>
    %16 = vector.broadcast %15 : vector<1x256xf32> to vector<2x256xf32>
    %17 = arith.mulf %14, %16 : vector<2x256xf32>
    %18 = vector.extract_strided_slice %3 {offsets = [1, 0], sizes = [1, 1], strides = [1, 1]} : vector<9x1xf32> to vector<1x1xf32>
    %19 = vector.broadcast %18 : vector<1x1xf32> to vector<2x256xf32>
    %20 = arith.mulf %19, %17 : vector<2x256xf32>
    %21 = arith.addf %13, %20 : vector<2x256xf32>
    %c0_11 = arith.constant 0 : index
    %c113 = arith.constant 113 : index
    %22 = vector.load %arg7[%c0_11, %c113] : memref<8x512xf32, #tpu.memory_space<vmem>>, vector<2x256xf32>
    %23 = vector.extract_strided_slice %2 {offsets = [2, 0], sizes = [1, 256], strides = [1, 1]} : vector<9x256xf32> to vector<1x256xf32>
    %24 = vector.broadcast %23 : vector<1x256xf32> to vector<2x256xf32>
    %25 = arith.mulf %22, %24 : vector<2x256xf32>
    %26 = vector.extract_strided_slice %3 {offsets = [2, 0], sizes = [1, 1], strides = [1, 1]} : vector<9x1xf32> to vector<1x1xf32>
    %27 = vector.broadcast %26 : vector<1x1xf32> to vector<2x256xf32>
    %28 = arith.mulf %27, %25 : vector<2x256xf32>
    %29 = arith.addf %21, %28 : vector<2x256xf32>
    %c0_12 = arith.constant 0 : index
    %c127 = arith.constant 127 : index
    %30 = vector.load %arg7[%c0_12, %c127] : memref<8x512xf32, #tpu.memory_space<vmem>>, vector<2x256xf32>
    %31 = vector.extract_strided_slice %2 {offsets = [3, 0], sizes = [1, 256], strides = [1, 1]} : vector<9x256xf32> to vector<1x256xf32>
    %32 = vector.broadcast %31 : vector<1x256xf32> to vector<2x256xf32>
    %33 = arith.mulf %30, %32 : vector<2x256xf32>
    %34 = vector.extract_strided_slice %3 {offsets = [3, 0], sizes = [1, 1], strides = [1, 1]} : vector<9x1xf32> to vector<1x1xf32>
    %35 = vector.broadcast %34 : vector<1x1xf32> to vector<2x256xf32>
    %36 = arith.mulf %35, %33 : vector<2x256xf32>
    %37 = arith.addf %29, %36 : vector<2x256xf32>
    %c0_13 = arith.constant 0 : index
    %c128_14 = arith.constant 128 : index
    %38 = vector.load %arg7[%c0_13, %c128_14] : memref<8x512xf32, #tpu.memory_space<vmem>>, vector<2x256xf32>
    %39 = vector.extract_strided_slice %2 {offsets = [4, 0], sizes = [1, 256], strides = [1, 1]} : vector<9x256xf32> to vector<1x256xf32>
    %40 = vector.broadcast %39 : vector<1x256xf32> to vector<2x256xf32>
    %41 = arith.mulf %38, %40 : vector<2x256xf32>
    %42 = vector.extract_strided_slice %3 {offsets = [4, 0], sizes = [1, 1], strides = [1, 1]} : vector<9x1xf32> to vector<1x1xf32>
    %43 = vector.broadcast %42 : vector<1x1xf32> to vector<2x256xf32>
    %44 = arith.mulf %43, %41 : vector<2x256xf32>
    %45 = arith.addf %37, %44 : vector<2x256xf32>
    %c0_15 = arith.constant 0 : index
    %c129 = arith.constant 129 : index
    %46 = vector.load %arg7[%c0_15, %c129] : memref<8x512xf32, #tpu.memory_space<vmem>>, vector<2x256xf32>
    %47 = vector.extract_strided_slice %2 {offsets = [5, 0], sizes = [1, 256], strides = [1, 1]} : vector<9x256xf32> to vector<1x256xf32>
    %48 = vector.broadcast %47 : vector<1x256xf32> to vector<2x256xf32>
    %49 = arith.mulf %46, %48 : vector<2x256xf32>
    %50 = vector.extract_strided_slice %3 {offsets = [5, 0], sizes = [1, 1], strides = [1, 1]} : vector<9x1xf32> to vector<1x1xf32>
    %51 = vector.broadcast %50 : vector<1x1xf32> to vector<2x256xf32>
    %52 = arith.mulf %51, %49 : vector<2x256xf32>
    %53 = arith.addf %45, %52 : vector<2x256xf32>
    %c0_16 = arith.constant 0 : index
    %c143 = arith.constant 143 : index
    %54 = vector.load %arg7[%c0_16, %c143] : memref<8x512xf32, #tpu.memory_space<vmem>>, vector<2x256xf32>
    %55 = vector.extract_strided_slice %2 {offsets = [6, 0], sizes = [1, 256], strides = [1, 1]} : vector<9x256xf32> to vector<1x256xf32>
    %56 = vector.broadcast %55 : vector<1x256xf32> to vector<2x256xf32>
    %57 = arith.mulf %54, %56 : vector<2x256xf32>
    %58 = vector.extract_strided_slice %3 {offsets = [6, 0], sizes = [1, 1], strides = [1, 1]} : vector<9x1xf32> to vector<1x1xf32>
    %59 = vector.broadcast %58 : vector<1x1xf32> to vector<2x256xf32>
    %60 = arith.mulf %59, %57 : vector<2x256xf32>
    %61 = arith.addf %53, %60 : vector<2x256xf32>
    %c0_17 = arith.constant 0 : index
    %c144 = arith.constant 144 : index
    %62 = vector.load %arg7[%c0_17, %c144] : memref<8x512xf32, #tpu.memory_space<vmem>>, vector<2x256xf32>
    %63 = vector.extract_strided_slice %2 {offsets = [7, 0], sizes = [1, 256], strides = [1, 1]} : vector<9x256xf32> to vector<1x256xf32>
    %64 = vector.broadcast %63 : vector<1x256xf32> to vector<2x256xf32>
    %65 = arith.mulf %62, %64 : vector<2x256xf32>
    %66 = vector.extract_strided_slice %3 {offsets = [7, 0], sizes = [1, 1], strides = [1, 1]} : vector<9x1xf32> to vector<1x1xf32>
    %67 = vector.broadcast %66 : vector<1x1xf32> to vector<2x256xf32>
    %68 = arith.mulf %67, %65 : vector<2x256xf32>
    %69 = arith.addf %61, %68 : vector<2x256xf32>
    %c0_18 = arith.constant 0 : index
    %c145 = arith.constant 145 : index
    %70 = vector.load %arg7[%c0_18, %c145] : memref<8x512xf32, #tpu.memory_space<vmem>>, vector<2x256xf32>
    %71 = vector.extract_strided_slice %2 {offsets = [8, 0], sizes = [1, 256], strides = [1, 1]} : vector<9x256xf32> to vector<1x256xf32>
    %72 = vector.broadcast %71 : vector<1x256xf32> to vector<2x256xf32>
    %73 = arith.mulf %70, %72 : vector<2x256xf32>
    %74 = vector.extract_strided_slice %3 {offsets = [8, 0], sizes = [1, 1], strides = [1, 1]} : vector<9x1xf32> to vector<1x1xf32>
    %75 = vector.broadcast %74 : vector<1x1xf32> to vector<2x256xf32>
    %76 = arith.mulf %75, %73 : vector<2x256xf32>
    %77 = arith.addf %69, %76 : vector<2x256xf32>
    %78 = vector.broadcast %4 : vector<1x1xf32> to vector<2x256xf32>
    %79 = arith.addf %77, %78 : vector<2x256xf32>
    %cst_19 = arith.constant 0.000000e+00 : f32
    %80 = vector.broadcast %cst_19 : f32 to vector<2x256xf32>
    %81 = arith.maximumf %79, %80 : vector<2x256xf32>
    %c0_20 = arith.constant 0 : index
    %c0_21 = arith.constant 0 : index
    %82 = vector.load %arg1[%c0_20, %c0_21] : memref<256x64xbf16, #tpu.memory_space<vmem>>, vector<256x64xbf16>
    %83 = arith.extf %82 : vector<256x64xbf16> to vector<256x64xf32>
    %cst_22 = arith.constant dense<0.000000e+00> : vector<2x64xf32>
    %84 = tpu.matmul %81, %83, %cst_22 {dimension_numbers = #tpu.dot_dimension_numbers<[1], [0], [0], [1], [0, 0, 1, 1], [], []>} : vector<2x256xf32>, vector<256x64xf32>, vector<2x64xf32> -> vector<2x64xf32>
    %c9_23 = arith.constant 9 : index
    %c0_24 = arith.constant 0 : index
    %85 = vector.load %arg3[%c9_23, %c0_24] : memref<36x256xf32, #tpu.memory_space<vmem>>, vector<9x64xf32>
    %c10 = arith.constant 10 : index
    %c0_25 = arith.constant 0 : index
    %86 = vector.load %arg5[%c10, %c0_25] : memref<293x36xf32, #tpu.memory_space<vmem>>, vector<9x4xf32>
    %c19 = arith.constant 19 : index
    %c0_26 = arith.constant 0 : index
    %87 = vector.load %arg5[%c19, %c0_26] : memref<293x36xf32, #tpu.memory_space<vmem>>, vector<4x1xf32>
    %c0_27 = arith.constant 0 : index
    %c128_28 = arith.constant 128 : index
    %88 = vector.load %arg7[%c0_27, %c128_28] : memref<8x512xf32, #tpu.memory_space<vmem>>, vector<2x64xf32>
    tpu.vector_store %arg7[%c0_27, %c128_28], %84 {strides = array<i32>} : memref<8x512xf32, #tpu.memory_space<vmem>>, vector<2x64xf32>,
    %c0_29 = arith.constant 0 : index
    %c119 = arith.constant 119 : index
    %89 = vector.load %arg7[%c0_29, %c119] : memref<8x512xf32, #tpu.memory_space<vmem>>, vector<2x64xf32>
    %90 = vector.extract_strided_slice %85 {offsets = [0, 0], sizes = [1, 64], strides = [1, 1]} : vector<9x64xf32> to vector<1x64xf32>
    %91 = vector.broadcast %90 : vector<1x64xf32> to vector<2x64xf32>
    %92 = arith.mulf %89, %91 : vector<2x64xf32>
    %c0_30 = arith.constant 0 : index
    %c120 = arith.constant 120 : index
    %93 = vector.load %arg7[%c0_30, %c120] : memref<8x512xf32, #tpu.memory_space<vmem>>, vector<2x64xf32>
    %94 = vector.extract_strided_slice %85 {offsets = [1, 0], sizes = [1, 64], strides = [1, 1]} : vector<9x64xf32> to vector<1x64xf32>
    %95 = vector.broadcast %94 : vector<1x64xf32> to vector<2x64xf32>
    %96 = arith.mulf %93, %95 : vector<2x64xf32>
    %c0_31 = arith.constant 0 : index
    %c121 = arith.constant 121 : index
    %97 = vector.load %arg7[%c0_31, %c121] : memref<8x512xf32, #tpu.memory_space<vmem>>, vector<2x64xf32>
    %98 = vector.extract_strided_slice %85 {offsets = [2, 0], sizes = [1, 64], strides = [1, 1]} : vector<9x64xf32> to vector<1x64xf32>
    %99 = vector.broadcast %98 : vector<1x64xf32> to vector<2x64xf32>
    %100 = arith.mulf %97, %99 : vector<2x64xf32>
    %c0_32 = arith.constant 0 : index
    %c127_33 = arith.constant 127 : index
    %101 = vector.load %arg7[%c0_32, %c127_33] : memref<8x512xf32, #tpu.memory_space<vmem>>, vector<2x64xf32>
    %102 = vector.extract_strided_slice %85 {offsets = [3, 0], sizes = [1, 64], strides = [1, 1]} : vector<9x64xf32> to vector<1x64xf32>
    %103 = vector.broadcast %102 : vector<1x64xf32> to vector<2x64xf32>
    %104 = arith.mulf %101, %103 : vector<2x64xf32>
    %c0_34 = arith.constant 0 : index
    %c128_35 = arith.constant 128 : index
    %105 = vector.load %arg7[%c0_34, %c128_35] : memref<8x512xf32, #tpu.memory_space<vmem>>, vector<2x64xf32>
    %106 = vector.extract_strided_slice %85 {offsets = [4, 0], sizes = [1, 64], strides = [1, 1]} : vector<9x64xf32> to vector<1x64xf32>
    %107 = vector.broadcast %106 : vector<1x64xf32> to vector<2x64xf32>
    %108 = arith.mulf %105, %107 : vector<2x64xf32>
    %c0_36 = arith.constant 0 : index
    %c129_37 = arith.constant 129 : index
    %109 = vector.load %arg7[%c0_36, %c129_37] : memref<8x512xf32, #tpu.memory_space<vmem>>, vector<2x64xf32>
    %110 = vector.extract_strided_slice %85 {offsets = [5, 0], sizes = [1, 64], strides = [1, 1]} : vector<9x64xf32> to vector<1x64xf32>
    %111 = vector.broadcast %110 : vector<1x64xf32> to vector<2x64xf32>
    %112 = arith.mulf %109, %111 : vector<2x64xf32>
    %c0_38 = arith.constant 0 : index
    %c135 = arith.constant 135 : index
    %113 = vector.load %arg7[%c0_38, %c135] : memref<8x512xf32, #tpu.memory_space<vmem>>, vector<2x64xf32>
    %114 = vector.extract_strided_slice %85 {offsets = [6, 0], sizes = [1, 64], strides = [1, 1]} : vector<9x64xf32> to vector<1x64xf32>
    %115 = vector.broadcast %114 : vector<1x64xf32> to vector<2x64xf32>
    %116 = arith.mulf %113, %115 : vector<2x64xf32>
    %c0_39 = arith.constant 0 : index
    %c136 = arith.constant 136 : index
    %117 = vector.load %arg7[%c0_39, %c136] : memref<8x512xf32, #tpu.memory_space<vmem>>, vector<2x64xf32>
    %118 = vector.extract_strided_slice %85 {offsets = [7, 0], sizes = [1, 64], strides = [1, 1]} : vector<9x64xf32> to vector<1x64xf32>
    %119 = vector.broadcast %118 : vector<1x64xf32> to vector<2x64xf32>
    %120 = arith.mulf %117, %119 : vector<2x64xf32>
    %c0_40 = arith.constant 0 : index
    %c137 = arith.constant 137 : index
    %121 = vector.load %arg7[%c0_40, %c137] : memref<8x512xf32, #tpu.memory_space<vmem>>, vector<2x64xf32>
    %122 = vector.extract_strided_slice %85 {offsets = [8, 0], sizes = [1, 64], strides = [1, 1]} : vector<9x64xf32> to vector<1x64xf32>
    %123 = vector.broadcast %122 : vector<1x64xf32> to vector<2x64xf32>
    %124 = arith.mulf %121, %123 : vector<2x64xf32>
    %125 = vector.extract_strided_slice %86 {offsets = [0, 0], sizes = [1, 1], strides = [1, 1]} : vector<9x4xf32> to vector<1x1xf32>
    %126 = vector.broadcast %125 : vector<1x1xf32> to vector<2x64xf32>
    %127 = arith.mulf %92, %126 : vector<2x64xf32>
    %128 = vector.extract_strided_slice %86 {offsets = [1, 0], sizes = [1, 1], strides = [1, 1]} : vector<9x4xf32> to vector<1x1xf32>
    %129 = vector.broadcast %128 : vector<1x1xf32> to vector<2x64xf32>
    %130 = arith.mulf %96, %129 : vector<2x64xf32>
    %131 = arith.addf %127, %130 : vector<2x64xf32>
    %132 = vector.extract_strided_slice %86 {offsets = [2, 0], sizes = [1, 1], strides = [1, 1]} : vector<9x4xf32> to vector<1x1xf32>
    %133 = vector.broadcast %132 : vector<1x1xf32> to vector<2x64xf32>
    %134 = arith.mulf %100, %133 : vector<2x64xf32>
    %135 = arith.addf %131, %134 : vector<2x64xf32>
    %136 = vector.extract_strided_slice %86 {offsets = [3, 0], sizes = [1, 1], strides = [1, 1]} : vector<9x4xf32> to vector<1x1xf32>
    %137 = vector.broadcast %136 : vector<1x1xf32> to vector<2x64xf32>
    %138 = arith.mulf %104, %137 : vector<2x64xf32>
    %139 = arith.addf %135, %138 : vector<2x64xf32>
    %140 = vector.extract_strided_slice %86 {offsets = [4, 0], sizes = [1, 1], strides = [1, 1]} : vector<9x4xf32> to vector<1x1xf32>
    %141 = vector.broadcast %140 : vector<1x1xf32> to vector<2x64xf32>
    %142 = arith.mulf %108, %141 : vector<2x64xf32>
    %143 = arith.addf %139, %142 : vector<2x64xf32>
    %144 = vector.extract_strided_slice %86 {offsets = [5, 0], sizes = [1, 1], strides = [1, 1]} : vector<9x4xf32> to vector<1x1xf32>
    %145 = vector.broadcast %144 : vector<1x1xf32> to vector<2x64xf32>
    %146 = arith.mulf %112, %145 : vector<2x64xf32>
    %147 = arith.addf %143, %146 : vector<2x64xf32>
    %148 = vector.extract_strided_slice %86 {offsets = [6, 0], sizes = [1, 1], strides = [1, 1]} : vector<9x4xf32> to vector<1x1xf32>
    %149 = vector.broadcast %148 : vector<1x1xf32> to vector<2x64xf32>
    %150 = arith.mulf %116, %149 : vector<2x64xf32>
    %151 = arith.addf %147, %150 : vector<2x64xf32>
    %152 = vector.extract_strided_slice %86 {offsets = [7, 0], sizes = [1, 1], strides = [1, 1]} : vector<9x4xf32> to vector<1x1xf32>
    %153 = vector.broadcast %152 : vector<1x1xf32> to vector<2x64xf32>
    %154 = arith.mulf %120, %153 : vector<2x64xf32>
    %155 = arith.addf %151, %154 : vector<2x64xf32>
    %156 = vector.extract_strided_slice %86 {offsets = [8, 0], sizes = [1, 1], strides = [1, 1]} : vector<9x4xf32> to vector<1x1xf32>
    %157 = vector.broadcast %156 : vector<1x1xf32> to vector<2x64xf32>
    %158 = arith.mulf %124, %157 : vector<2x64xf32>
    %159 = arith.addf %155, %158 : vector<2x64xf32>
    %160 = vector.extract_strided_slice %87 {offsets = [0, 0], sizes = [1, 1], strides = [1, 1]} : vector<4x1xf32> to vector<1x1xf32>
    %161 = vector.broadcast %160 : vector<1x1xf32> to vector<2x64xf32>
    %162 = arith.addf %159, %161 : vector<2x64xf32>
    %cst_41 = arith.constant 0.000000e+00 : f32
    %163 = vector.broadcast %cst_41 : f32 to vector<2x64xf32>
    %164 = arith.maximumf %162, %163 : vector<2x64xf32>
    %165 = vector.extract_strided_slice %86 {offsets = [0, 1], sizes = [1, 1], strides = [1, 1]} : vector<9x4xf32> to vector<1x1xf32>
    %166 = vector.broadcast %165 : vector<1x1xf32> to vector<2x64xf32>
    %167 = arith.mulf %92, %166 : vector<2x64xf32>
    %168 = vector.extract_strided_slice %86 {offsets = [1, 1], sizes = [1, 1], strides = [1, 1]} : vector<9x4xf32> to vector<1x1xf32>
    %169 = vector.broadcast %168 : vector<1x1xf32> to vector<2x64xf32>
    %170 = arith.mulf %96, %169 : vector<2x64xf32>
    %171 = arith.addf %167, %170 : vector<2x64xf32>
    %172 = vector.extract_strided_slice %86 {offsets = [2, 1], sizes = [1, 1], strides = [1, 1]} : vector<9x4xf32> to vector<1x1xf32>
    %173 = vector.broadcast %172 : vector<1x1xf32> to vector<2x64xf32>
    %174 = arith.mulf %100, %173 : vector<2x64xf32>
    %175 = arith.addf %171, %174 : vector<2x64xf32>
    %176 = vector.extract_strided_slice %86 {offsets = [3, 1], sizes = [1, 1], strides = [1, 1]} : vector<9x4xf32> to vector<1x1xf32>
    %177 = vector.broadcast %176 : vector<1x1xf32> to vector<2x64xf32>
    %178 = arith.mulf %104, %177 : vector<2x64xf32>
    %179 = arith.addf %175, %178 : vector<2x64xf32>
    %180 = vector.extract_strided_slice %86 {offsets = [4, 1], sizes = [1, 1], strides = [1, 1]} : vector<9x4xf32> to vector<1x1xf32>
    %181 = vector.broadcast %180 : vector<1x1xf32> to vector<2x64xf32>
    %182 = arith.mulf %108, %181 : vector<2x64xf32>
    %183 = arith.addf %179, %182 : vector<2x64xf32>
    %184 = vector.extract_strided_slice %86 {offsets = [5, 1], sizes = [1, 1], strides = [1, 1]} : vector<9x4xf32> to vector<1x1xf32>
    %185 = vector.broadcast %184 : vector<1x1xf32> to vector<2x64xf32>
    %186 = arith.mulf %112, %185 : vector<2x64xf32>
    %187 = arith.addf %183, %186 : vector<2x64xf32>
    %188 = vector.extract_strided_slice %86 {offsets = [6, 1], sizes = [1, 1], strides = [1, 1]} : vector<9x4xf32> to vector<1x1xf32>
    %189 = vector.broadcast %188 : vector<1x1xf32> to vector<2x64xf32>
    %190 = arith.mulf %116, %189 : vector<2x64xf32>
    %191 = arith.addf %187, %190 : vector<2x64xf32>
    %192 = vector.extract_strided_slice %86 {offsets = [7, 1], sizes = [1, 1], strides = [1, 1]} : vector<9x4xf32> to vector<1x1xf32>
    %193 = vector.broadcast %192 : vector<1x1xf32> to vector<2x64xf32>
    %194 = arith.mulf %120, %193 : vector<2x64xf32>
    %195 = arith.addf %191, %194 : vector<2x64xf32>
    %196 = vector.extract_strided_slice %86 {offsets = [8, 1], sizes = [1, 1], strides = [1, 1]} : vector<9x4xf32> to vector<1x1xf32>
    %197 = vector.broadcast %196 : vector<1x1xf32> to vector<2x64xf32>
    %198 = arith.mulf %124, %197 : vector<2x64xf32>
    %199 = arith.addf %195, %198 : vector<2x64xf32>
    %200 = vector.extract_strided_slice %87 {offsets = [1, 0], sizes = [1, 1], strides = [1, 1]} : vector<4x1xf32> to vector<1x1xf32>
    %201 = vector.broadcast %200 : vector<1x1xf32> to vector<2x64xf32>
    %202 = arith.addf %199, %201 : vector<2x64xf32>
    %cst_42 = arith.constant 0.000000e+00 : f32
    %203 = vector.broadcast %cst_42 : f32 to vector<2x64xf32>
    %204 = arith.maximumf %202, %203 : vector<2x64xf32>
    %205 = vector.extract_strided_slice %86 {offsets = [0, 2], sizes = [1, 1], strides = [1, 1]} : vector<9x4xf32> to vector<1x1xf32>
    %206 = vector.broadcast %205 : vector<1x1xf32> to vector<2x64xf32>
    %207 = arith.mulf %92, %206 : vector<2x64xf32>
    %208 = vector.extract_strided_slice %86 {offsets = [1, 2], sizes = [1, 1], strides = [1, 1]} : vector<9x4xf32> to vector<1x1xf32>
    %209 = vector.broadcast %208 : vector<1x1xf32> to vector<2x64xf32>
    %210 = arith.mulf %96, %209 : vector<2x64xf32>
    %211 = arith.addf %207, %210 : vector<2x64xf32>
    %212 = vector.extract_strided_slice %86 {offsets = [2, 2], sizes = [1, 1], strides = [1, 1]} : vector<9x4xf32> to vector<1x1xf32>
    %213 = vector.broadcast %212 : vector<1x1xf32> to vector<2x64xf32>
    %214 = arith.mulf %100, %213 : vector<2x64xf32>
    %215 = arith.addf %211, %214 : vector<2x64xf32>
    %216 = vector.extract_strided_slice %86 {offsets = [3, 2], sizes = [1, 1], strides = [1, 1]} : vector<9x4xf32> to vector<1x1xf32>
    %217 = vector.broadcast %216 : vector<1x1xf32> to vector<2x64xf32>
    %218 = arith.mulf %104, %217 : vector<2x64xf32>
    %219 = arith.addf %215, %218 : vector<2x64xf32>
    %220 = vector.extract_strided_slice %86 {offsets = [4, 2], sizes = [1, 1], strides = [1, 1]} : vector<9x4xf32> to vector<1x1xf32>
    %221 = vector.broadcast %220 : vector<1x1xf32> to vector<2x64xf32>
    %222 = arith.mulf %108, %221 : vector<2x64xf32>
    %223 = arith.addf %219, %222 : vector<2x64xf32>
    %224 = vector.extract_strided_slice %86 {offsets = [5, 2], sizes = [1, 1], strides = [1, 1]} : vector<9x4xf32> to vector<1x1xf32>
    %225 = vector.broadcast %224 : vector<1x1xf32> to vector<2x64xf32>
    %226 = arith.mulf %112, %225 : vector<2x64xf32>
    %227 = arith.addf %223, %226 : vector<2x64xf32>
    %228 = vector.extract_strided_slice %86 {offsets = [6, 2], sizes = [1, 1], strides = [1, 1]} : vector<9x4xf32> to vector<1x1xf32>
    %229 = vector.broadcast %228 : vector<1x1xf32> to vector<2x64xf32>
    %230 = arith.mulf %116, %229 : vector<2x64xf32>
    %231 = arith.addf %227, %230 : vector<2x64xf32>
    %232 = vector.extract_strided_slice %86 {offsets = [7, 2], sizes = [1, 1], strides = [1, 1]} : vector<9x4xf32> to vector<1x1xf32>
    %233 = vector.broadcast %232 : vector<1x1xf32> to vector<2x64xf32>
    %234 = arith.mulf %120, %233 : vector<2x64xf32>
    %235 = arith.addf %231, %234 : vector<2x64xf32>
    %236 = vector.extract_strided_slice %86 {offsets = [8, 2], sizes = [1, 1], strides = [1, 1]} : vector<9x4xf32> to vector<1x1xf32>
    %237 = vector.broadcast %236 : vector<1x1xf32> to vector<2x64xf32>
    %238 = arith.mulf %124, %237 : vector<2x64xf32>
    %239 = arith.addf %235, %238 : vector<2x64xf32>
    %240 = vector.extract_strided_slice %87 {offsets = [2, 0], sizes = [1, 1], strides = [1, 1]} : vector<4x1xf32> to vector<1x1xf32>
    %241 = vector.broadcast %240 : vector<1x1xf32> to vector<2x64xf32>
    %242 = arith.addf %239, %241 : vector<2x64xf32>
    %cst_43 = arith.constant 0.000000e+00 : f32
    %243 = vector.broadcast %cst_43 : f32 to vector<2x64xf32>
    %244 = arith.maximumf %242, %243 : vector<2x64xf32>
    %245 = vector.extract_strided_slice %86 {offsets = [0, 3], sizes = [1, 1], strides = [1, 1]} : vector<9x4xf32> to vector<1x1xf32>
    %246 = vector.broadcast %245 : vector<1x1xf32> to vector<2x64xf32>
    %247 = arith.mulf %92, %246 : vector<2x64xf32>
    %248 = vector.extract_strided_slice %86 {offsets = [1, 3], sizes = [1, 1], strides = [1, 1]} : vector<9x4xf32> to vector<1x1xf32>
    %249 = vector.broadcast %248 : vector<1x1xf32> to vector<2x64xf32>
    %250 = arith.mulf %96, %249 : vector<2x64xf32>
    %251 = arith.addf %247, %250 : vector<2x64xf32>
    %252 = vector.extract_strided_slice %86 {offsets = [2, 3], sizes = [1, 1], strides = [1, 1]} : vector<9x4xf32> to vector<1x1xf32>
    %253 = vector.broadcast %252 : vector<1x1xf32> to vector<2x64xf32>
    %254 = arith.mulf %100, %253 : vector<2x64xf32>
    %255 = arith.addf %251, %254 : vector<2x64xf32>
    %256 = vector.extract_strided_slice %86 {offsets = [3, 3], sizes = [1, 1], strides = [1, 1]} : vector<9x4xf32> to vector<1x1xf32>
    %257 = vector.broadcast %256 : vector<1x1xf32> to vector<2x64xf32>
    %258 = arith.mulf %104, %257 : vector<2x64xf32>
    %259 = arith.addf %255, %258 : vector<2x64xf32>
    %260 = vector.extract_strided_slice %86 {offsets = [4, 3], sizes = [1, 1], strides = [1, 1]} : vector<9x4xf32> to vector<1x1xf32>
    %261 = vector.broadcast %260 : vector<1x1xf32> to vector<2x64xf32>
    %262 = arith.mulf %108, %261 : vector<2x64xf32>
    %263 = arith.addf %259, %262 : vector<2x64xf32>
    %264 = vector.extract_strided_slice %86 {offsets = [5, 3], sizes = [1, 1], strides = [1, 1]} : vector<9x4xf32> to vector<1x1xf32>
    %265 = vector.broadcast %264 : vector<1x1xf32> to vector<2x64xf32>
    %266 = arith.mulf %112, %265 : vector<2x64xf32>
    %267 = arith.addf %263, %266 : vector<2x64xf32>
    %268 = vector.extract_strided_slice %86 {offsets = [6, 3], sizes = [1, 1], strides = [1, 1]} : vector<9x4xf32> to vector<1x1xf32>
    %269 = vector.broadcast %268 : vector<1x1xf32> to vector<2x64xf32>
    %270 = arith.mulf %116, %269 : vector<2x64xf32>
    %271 = arith.addf %267, %270 : vector<2x64xf32>
    %272 = vector.extract_strided_slice %86 {offsets = [7, 3], sizes = [1, 1], strides = [1, 1]} : vector<9x4xf32> to vector<1x1xf32>
    %273 = vector.broadcast %272 : vector<1x1xf32> to vector<2x64xf32>
    %274 = arith.mulf %120, %273 : vector<2x64xf32>
    %275 = arith.addf %271, %274 : vector<2x64xf32>
    %276 = vector.extract_strided_slice %86 {offsets = [8, 3], sizes = [1, 1], strides = [1, 1]} : vector<9x4xf32> to vector<1x1xf32>
    %277 = vector.broadcast %276 : vector<1x1xf32> to vector<2x64xf32>
    %278 = arith.mulf %124, %277 : vector<2x64xf32>
    %279 = arith.addf %275, %278 : vector<2x64xf32>
    %280 = vector.extract_strided_slice %87 {offsets = [3, 0], sizes = [1, 1], strides = [1, 1]} : vector<4x1xf32> to vector<1x1xf32>
    %281 = vector.broadcast %280 : vector<1x1xf32> to vector<2x64xf32>
    %282 = arith.addf %279, %281 : vector<2x64xf32>
    %cst_44 = arith.constant 0.000000e+00 : f32
    %283 = vector.broadcast %cst_44 : f32 to vector<2x64xf32>
    %284 = arith.maximumf %282, %283 : vector<2x64xf32>
    %285 = tpu.concatenate %164, %204, %244, %284 in 0 : vector<2x64xf32>, vector<2x64xf32>, vector<2x64xf32>, vector<2x64xf32> -> vector<8x64xf32>
    %c0_45 = arith.constant 0 : index
    %c0_46 = arith.constant 0 : index
    %286 = vector.load %arg2[%c0_45, %c0_46] : memref<64x16xbf16, #tpu.memory_space<vmem>>, vector<64x16xbf16>
    %287 = arith.extf %286 : vector<64x16xbf16> to vector<64x16xf32>
    %cst_47 = arith.constant dense<0.000000e+00> : vector<8x16xf32>
    %288 = tpu.matmul %285, %287, %cst_47 {dimension_numbers = #tpu.dot_dimension_numbers<[1], [0], [0], [1], [0, 0, 1, 1], [], []>} : vector<8x64xf32>, vector<64x16xf32>, vector<8x16xf32> -> vector<8x16xf32>
    %289 = vector.extract_strided_slice %288 {offsets = [0, 0], sizes = [1, 16], strides = [1, 1]} : vector<8x16xf32> to vector<1x16xf32>
    %c0_48 = arith.constant 0 : index
    %c128_49 = arith.constant 128 : index
    %290 = vector.load %arg7[%c0_48, %c128_49] : memref<8x512xf32, #tpu.memory_space<vmem>>, vector<1x16xf32>
    tpu.vector_store %arg7[%c0_48, %c128_49], %289 {strides = array<i32>} : memref<8x512xf32, #tpu.memory_space<vmem>>, vector<1x16xf32>,
    %291 = vector.extract_strided_slice %288 {offsets = [1, 0], sizes = [1, 16], strides = [1, 1]} : vector<8x16xf32> to vector<1x16xf32>
    %c0_50 = arith.constant 0 : index
    %c144_51 = arith.constant 144 : index
    %292 = vector.load %arg7[%c0_50, %c144_51] : memref<8x512xf32, #tpu.memory_space<vmem>>, vector<1x16xf32>
    tpu.vector_store %arg7[%c0_50, %c144_51], %291 {strides = array<i32>} : memref<8x512xf32, #tpu.memory_space<vmem>>, vector<1x16xf32>,
    %293 = vector.extract_strided_slice %288 {offsets = [2, 0], sizes = [1, 16], strides = [1, 1]} : vector<8x16xf32> to vector<1x16xf32>
    %c1 = arith.constant 1 : index
    %c128_52 = arith.constant 128 : index
    %294 = vector.load %arg7[%c1, %c128_52] : memref<8x512xf32, #tpu.memory_space<vmem>>, vector<1x16xf32>
    tpu.vector_store %arg7[%c1, %c128_52], %293 {strides = array<i32>} : memref<8x512xf32, #tpu.memory_space<vmem>>, vector<1x16xf32>,
    %295 = vector.extract_strided_slice %288 {offsets = [3, 0], sizes = [1, 16], strides = [1, 1]} : vector<8x16xf32> to vector<1x16xf32>
    %c1_53 = arith.constant 1 : index
    %c144_54 = arith.constant 144 : index
    %296 = vector.load %arg7[%c1_53, %c144_54] : memref<8x512xf32, #tpu.memory_space<vmem>>, vector<1x16xf32>
    tpu.vector_store %arg7[%c1_53, %c144_54], %295 {strides = array<i32>} : memref<8x512xf32, #tpu.memory_space<vmem>>, vector<1x16xf32>,
    %297 = vector.extract_strided_slice %288 {offsets = [4, 0], sizes = [1, 16], strides = [1, 1]} : vector<8x16xf32> to vector<1x16xf32>
    %c2 = arith.constant 2 : index
    %c128_55 = arith.constant 128 : index
    %298 = vector.load %arg7[%c2, %c128_55] : memref<8x512xf32, #tpu.memory_space<vmem>>, vector<1x16xf32>
    tpu.vector_store %arg7[%c2, %c128_55], %297 {strides = array<i32>} : memref<8x512xf32, #tpu.memory_space<vmem>>, vector<1x16xf32>,
    %299 = vector.extract_strided_slice %288 {offsets = [5, 0], sizes = [1, 16], strides = [1, 1]} : vector<8x16xf32> to vector<1x16xf32>
    %c2_56 = arith.constant 2 : index
    %c144_57 = arith.constant 144 : index
    %300 = vector.load %arg7[%c2_56, %c144_57] : memref<8x512xf32, #tpu.memory_space<vmem>>, vector<1x16xf32>
    tpu.vector_store %arg7[%c2_56, %c144_57], %299 {strides = array<i32>} : memref<8x512xf32, #tpu.memory_space<vmem>>, vector<1x16xf32>,
    %301 = vector.extract_strided_slice %288 {offsets = [6, 0], sizes = [1, 16], strides = [1, 1]} : vector<8x16xf32> to vector<1x16xf32>
    %c3 = arith.constant 3 : index
    %c128_58 = arith.constant 128 : index
    %302 = vector.load %arg7[%c3, %c128_58] : memref<8x512xf32, #tpu.memory_space<vmem>>, vector<1x16xf32>
    tpu.vector_store %arg7[%c3, %c128_58], %301 {strides = array<i32>} : memref<8x512xf32, #tpu.memory_space<vmem>>, vector<1x16xf32>,
    %303 = vector.extract_strided_slice %288 {offsets = [7, 0], sizes = [1, 16], strides = [1, 1]} : vector<8x16xf32> to vector<1x16xf32>
    %c3_59 = arith.constant 3 : index
    %c144_60 = arith.constant 144 : index
    %304 = vector.load %arg7[%c3_59, %c144_60] : memref<8x512xf32, #tpu.memory_space<vmem>>, vector<1x16xf32>
    tpu.vector_store %arg7[%c3_59, %c144_60], %303 {strides = array<i32>} : memref<8x512xf32, #tpu.memory_space<vmem>>, vector<1x16xf32>,
    %c18 = arith.constant 18 : index
    %c0_61 = arith.constant 0 : index
    %305 = vector.load %arg3[%c18, %c0_61] : memref<36x256xf32, #tpu.memory_space<vmem>>, vector<9x32xf32>
    %c0_62 = arith.constant 0 : index
    %c123 = arith.constant 123 : index
    %306 = vector.load %arg7[%c0_62, %c123] : memref<8x512xf32, #tpu.memory_space<vmem>>, vector<4x32xf32>
    %307 = vector.extract_strided_slice %305 {offsets = [0, 0], sizes = [1, 32], strides = [1, 1]} : vector<9x32xf32> to vector<1x32xf32>
    %308 = vector.broadcast %307 : vector<1x32xf32> to vector<4x32xf32>
    %309 = arith.mulf %306, %308 : vector<4x32xf32>
    %c0_63 = arith.constant 0 : index
    %c124 = arith.constant 124 : index
    %310 = vector.load %arg7[%c0_63, %c124] : memref<8x512xf32, #tpu.memory_space<vmem>>, vector<4x32xf32>
    %311 = vector.extract_strided_slice %305 {offsets = [1, 0], sizes = [1, 32], strides = [1, 1]} : vector<9x32xf32> to vector<1x32xf32>
    %312 = vector.broadcast %311 : vector<1x32xf32> to vector<4x32xf32>
    %313 = arith.mulf %310, %312 : vector<4x32xf32>
    %c0_64 = arith.constant 0 : index
    %c125 = arith.constant 125 : index
    %314 = vector.load %arg7[%c0_64, %c125] : memref<8x512xf32, #tpu.memory_space<vmem>>, vector<4x32xf32>
    %315 = vector.extract_strided_slice %305 {offsets = [2, 0], sizes = [1, 32], strides = [1, 1]} : vector<9x32xf32> to vector<1x32xf32>
    %316 = vector.broadcast %315 : vector<1x32xf32> to vector<4x32xf32>
    %317 = arith.mulf %314, %316 : vector<4x32xf32>
    %c0_65 = arith.constant 0 : index
    %c127_66 = arith.constant 127 : index
    %318 = vector.load %arg7[%c0_65, %c127_66] : memref<8x512xf32, #tpu.memory_space<vmem>>, vector<4x32xf32>
    %319 = vector.extract_strided_slice %305 {offsets = [3, 0], sizes = [1, 32], strides = [1, 1]} : vector<9x32xf32> to vector<1x32xf32>
    %320 = vector.broadcast %319 : vector<1x32xf32> to vector<4x32xf32>
    %321 = arith.mulf %318, %320 : vector<4x32xf32>
    %c0_67 = arith.constant 0 : index
    %c128_68 = arith.constant 128 : index
    %322 = vector.load %arg7[%c0_67, %c128_68] : memref<8x512xf32, #tpu.memory_space<vmem>>, vector<4x32xf32>
    %323 = vector.extract_strided_slice %305 {offsets = [4, 0], sizes = [1, 32], strides = [1, 1]} : vector<9x32xf32> to vector<1x32xf32>
    %324 = vector.broadcast %323 : vector<1x32xf32> to vector<4x32xf32>
    %325 = arith.mulf %322, %324 : vector<4x32xf32>
    %c0_69 = arith.constant 0 : index
    %c129_70 = arith.constant 129 : index
    %326 = vector.load %arg7[%c0_69, %c129_70] : memref<8x512xf32, #tpu.memory_space<vmem>>, vector<4x32xf32>
    %327 = vector.extract_strided_slice %305 {offsets = [5, 0], sizes = [1, 32], strides = [1, 1]} : vector<9x32xf32> to vector<1x32xf32>
    %328 = vector.broadcast %327 : vector<1x32xf32> to vector<4x32xf32>
    %329 = arith.mulf %326, %328 : vector<4x32xf32>
    %c0_71 = arith.constant 0 : index
    %c131 = arith.constant 131 : index
    %330 = vector.load %arg7[%c0_71, %c131] : memref<8x512xf32, #tpu.memory_space<vmem>>, vector<4x32xf32>
    %331 = vector.extract_strided_slice %305 {offsets = [6, 0], sizes = [1, 32], strides = [1, 1]} : vector<9x32xf32> to vector<1x32xf32>
    %332 = vector.broadcast %331 : vector<1x32xf32> to vector<4x32xf32>
    %333 = arith.mulf %330, %332 : vector<4x32xf32>
    %c0_72 = arith.constant 0 : index
    %c132 = arith.constant 132 : index
    %334 = vector.load %arg7[%c0_72, %c132] : memref<8x512xf32, #tpu.memory_space<vmem>>, vector<4x32xf32>
    %335 = vector.extract_strided_slice %305 {offsets = [7, 0], sizes = [1, 32], strides = [1, 1]} : vector<9x32xf32> to vector<1x32xf32>
    %336 = vector.broadcast %335 : vector<1x32xf32> to vector<4x32xf32>
    %337 = arith.mulf %334, %336 : vector<4x32xf32>
    %c0_73 = arith.constant 0 : index
    %c133 = arith.constant 133 : index
    %338 = vector.load %arg7[%c0_73, %c133] : memref<8x512xf32, #tpu.memory_space<vmem>>, vector<4x32xf32>
    %339 = vector.extract_strided_slice %305 {offsets = [8, 0], sizes = [1, 32], strides = [1, 1]} : vector<9x32xf32> to vector<1x32xf32>
    %340 = vector.broadcast %339 : vector<1x32xf32> to vector<4x32xf32>
    %341 = arith.mulf %338, %340 : vector<4x32xf32>
    %342 = tpu.concatenate %309, %313, %317, %321, %325, %329, %333, %337, %341 in 0 : vector<4x32xf32>, vector<4x32xf32>, vector<4x32xf32>, vector<4x32xf32>, vector<4x32xf32>, vector<4x32xf32>, vector<4x32xf32>, vector<4x32xf32>, vector<4x32xf32> -> vector<36x32xf32>
    %c23 = arith.constant 23 : index
    %c0_74 = arith.constant 0 : index
    %343 = vector.load %arg5[%c23, %c0_74] : memref<293x36xf32, #tpu.memory_space<vmem>>, vector<8x36xf32>
    %cst_75 = arith.constant dense<0.000000e+00> : vector<8x32xf32>
    %344 = tpu.matmul %343, %342, %cst_75 {dimension_numbers = #tpu.dot_dimension_numbers<[1], [0], [0], [1], [0, 0, 1, 1], [], []>} : vector<8x36xf32>, vector<36x32xf32>, vector<8x32xf32> -> vector<8x32xf32>
    %c31 = arith.constant 31 : index
    %c0_76 = arith.constant 0 : index
    %345 = vector.load %arg5[%c31, %c0_76] : memref<293x36xf32, #tpu.memory_space<vmem>>, vector<8x1xf32>
    %346 = vector.broadcast %345 : vector<8x1xf32> to vector<8x32xf32>
    %347 = arith.addf %344, %346 : vector<8x32xf32>
    %cst_77 = arith.constant 0.000000e+00 : f32
    %348 = vector.broadcast %cst_77 : f32 to vector<8x32xf32>
    %349 = arith.maximumf %347, %348 : vector<8x32xf32>
    %c253 = arith.constant 253 : index
    %c0_78 = arith.constant 0 : index
    %350 = vector.load %arg5[%c253, %c0_78] : memref<293x36xf32, #tpu.memory_space<vmem>>, vector<32x8xf32>
    %cst_79 = arith.constant dense<0.000000e+00> : vector<8x8xf32>
    %351 = tpu.matmul %349, %350, %cst_79 {dimension_numbers = #tpu.dot_dimension_numbers<[1], [0], [0], [1], [0, 0, 1, 1], [], []>} : vector<8x32xf32>, vector<32x8xf32>, vector<8x8xf32> -> vector<8x8xf32>
    %c27 = arith.constant 27 : index
    %c0_80 = arith.constant 0 : index
    %352 = vector.load %arg3[%c27, %c0_80] : memref<36x256xf32, #tpu.memory_space<vmem>>, vector<9x8xf32>
    %c0_81 = arith.constant 0 : index
    %c128_82 = arith.constant 128 : index
    %353 = vector.load %arg7[%c0_81, %c128_82] : memref<8x512xf32, #tpu.memory_space<vmem>>, vector<8x8xf32>
    tpu.vector_store %arg7[%c0_81, %c128_82], %351 {strides = array<i32>} : memref<8x512xf32, #tpu.memory_space<vmem>>, vector<8x8xf32>,
    %c0_83 = arith.constant 0 : index
    %c125_84 = arith.constant 125 : index
    %354 = vector.load %arg7[%c0_83, %c125_84] : memref<8x512xf32, #tpu.memory_space<vmem>>, vector<8x8xf32>
    %355 = vector.extract_strided_slice %352 {offsets = [0, 0], sizes = [1, 8], strides = [1, 1]} : vector<9x8xf32> to vector<1x8xf32>
    %356 = vector.broadcast %355 : vector<1x8xf32> to vector<8x8xf32>
    %357 = arith.mulf %354, %356 : vector<8x8xf32>
    %c0_85 = arith.constant 0 : index
    %c126 = arith.constant 126 : index
    %358 = vector.load %arg7[%c0_85, %c126] : memref<8x512xf32, #tpu.memory_space<vmem>>, vector<8x8xf32>
    %359 = vector.extract_strided_slice %352 {offsets = [1, 0], sizes = [1, 8], strides = [1, 1]} : vector<9x8xf32> to vector<1x8xf32>
    %360 = vector.broadcast %359 : vector<1x8xf32> to vector<8x8xf32>
    %361 = arith.mulf %358, %360 : vector<8x8xf32>
    %c0_86 = arith.constant 0 : index
    %c127_87 = arith.constant 127 : index
    %362 = vector.load %arg7[%c0_86, %c127_87] : memref<8x512xf32, #tpu.memory_space<vmem>>, vector<8x8xf32>
    %363 = vector.extract_strided_slice %352 {offsets = [2, 0], sizes = [1, 8], strides = [1, 1]} : vector<9x8xf32> to vector<1x8xf32>
    %364 = vector.broadcast %363 : vector<1x8xf32> to vector<8x8xf32>
    %365 = arith.mulf %362, %364 : vector<8x8xf32>
    %c0_88 = arith.constant 0 : index
    %c127_89 = arith.constant 127 : index
    %366 = vector.load %arg7[%c0_88, %c127_89] : memref<8x512xf32, #tpu.memory_space<vmem>>, vector<8x8xf32>
    %367 = vector.extract_strided_slice %352 {offsets = [3, 0], sizes = [1, 8], strides = [1, 1]} : vector<9x8xf32> to vector<1x8xf32>
    %368 = vector.broadcast %367 : vector<1x8xf32> to vector<8x8xf32>
    %369 = arith.mulf %366, %368 : vector<8x8xf32>
    %c0_90 = arith.constant 0 : index
    %c128_91 = arith.constant 128 : index
    %370 = vector.load %arg7[%c0_90, %c128_91] : memref<8x512xf32, #tpu.memory_space<vmem>>, vector<8x8xf32>
    %371 = vector.extract_strided_slice %352 {offsets = [4, 0], sizes = [1, 8], strides = [1, 1]} : vector<9x8xf32> to vector<1x8xf32>
    %372 = vector.broadcast %371 : vector<1x8xf32> to vector<8x8xf32>
    %373 = arith.mulf %370, %372 : vector<8x8xf32>
    %c0_92 = arith.constant 0 : index
    %c129_93 = arith.constant 129 : index
    %374 = vector.load %arg7[%c0_92, %c129_93] : memref<8x512xf32, #tpu.memory_space<vmem>>, vector<8x8xf32>
    %375 = vector.extract_strided_slice %352 {offsets = [5, 0], sizes = [1, 8], strides = [1, 1]} : vector<9x8xf32> to vector<1x8xf32>
    %376 = vector.broadcast %375 : vector<1x8xf32> to vector<8x8xf32>
    %377 = arith.mulf %374, %376 : vector<8x8xf32>
    %c0_94 = arith.constant 0 : index
    %c129_95 = arith.constant 129 : index
    %378 = vector.load %arg7[%c0_94, %c129_95] : memref<8x512xf32, #tpu.memory_space<vmem>>, vector<8x8xf32>
    %379 = vector.extract_strided_slice %352 {offsets = [6, 0], sizes = [1, 8], strides = [1, 1]} : vector<9x8xf32> to vector<1x8xf32>
    %380 = vector.broadcast %379 : vector<1x8xf32> to vector<8x8xf32>
    %381 = arith.mulf %378, %380 : vector<8x8xf32>
    %c0_96 = arith.constant 0 : index
    %c130 = arith.constant 130 : index
    %382 = vector.load %arg7[%c0_96, %c130] : memref<8x512xf32, #tpu.memory_space<vmem>>, vector<8x8xf32>
    %383 = vector.extract_strided_slice %352 {offsets = [7, 0], sizes = [1, 8], strides = [1, 1]} : vector<9x8xf32> to vector<1x8xf32>
    %384 = vector.broadcast %383 : vector<1x8xf32> to vector<8x8xf32>
    %385 = arith.mulf %382, %384 : vector<8x8xf32>
    %c0_97 = arith.constant 0 : index
    %c131_98 = arith.constant 131 : index
    %386 = vector.load %arg7[%c0_97, %c131_98] : memref<8x512xf32, #tpu.memory_space<vmem>>, vector<8x8xf32>
    %387 = vector.extract_strided_slice %352 {offsets = [8, 0], sizes = [1, 8], strides = [1, 1]} : vector<9x8xf32> to vector<1x8xf32>
    %388 = vector.broadcast %387 : vector<1x8xf32> to vector<8x8xf32>
    %389 = arith.mulf %386, %388 : vector<8x8xf32>
    %390 = tpu.concatenate %357, %361, %365, %369, %373, %377, %381, %385, %389 in 0 : vector<8x8xf32>, vector<8x8xf32>, vector<8x8xf32>, vector<8x8xf32>, vector<8x8xf32>, vector<8x8xf32>, vector<8x8xf32>, vector<8x8xf32>, vector<8x8xf32> -> vector<72x8xf32>
    %c0_99 = arith.constant 0 : index
    %c0_100 = arith.constant 0 : index
    %391 = vector.load %arg4[%c0_99, %c0_100] : memref<16x72xf32, #tpu.memory_space<vmem>>, vector<16x72xf32>
    %cst_101 = arith.constant dense<0.000000e+00> : vector<16x8xf32>
    %392 = tpu.matmul %391, %390, %cst_101 {dimension_numbers = #tpu.dot_dimension_numbers<[1], [0], [0], [1], [0, 0, 1, 1], [], []>} : vector<16x72xf32>, vector<72x8xf32>, vector<16x8xf32> -> vector<16x8xf32>
    %c39 = arith.constant 39 : index
    %c0_102 = arith.constant 0 : index
    %393 = vector.load %arg5[%c39, %c0_102] : memref<293x36xf32, #tpu.memory_space<vmem>>, vector<16x1xf32>
    %394 = vector.broadcast %393 : vector<16x1xf32> to vector<16x8xf32>
    %395 = arith.addf %392, %394 : vector<16x8xf32>
    %cst_103 = arith.constant 0.000000e+00 : f32
    %396 = vector.broadcast %cst_103 : f32 to vector<16x8xf32>
    %397 = arith.maximumf %395, %396 : vector<16x8xf32>
    %c285 = arith.constant 285 : index
    %c0_104 = arith.constant 0 : index
    %398 = vector.load %arg5[%c285, %c0_104] : memref<293x36xf32, #tpu.memory_space<vmem>>, vector<8x2xf32>
    %cst_105 = arith.constant dense<0.000000e+00> : vector<16x2xf32>
    %399 = tpu.matmul %397, %398, %cst_105 {dimension_numbers = #tpu.dot_dimension_numbers<[1], [0], [0], [1], [0, 0, 1, 1], [], []>} : vector<16x8xf32>, vector<8x2xf32>, vector<16x2xf32> -> vector<16x2xf32>
    %c55 = arith.constant 55 : index
    %c0_106 = arith.constant 0 : index
    %400 = vector.load %arg5[%c55, %c0_106] : memref<293x36xf32, #tpu.memory_space<vmem>>, vector<16x16xf32>
    %cst_107 = arith.constant dense<0.000000e+00> : vector<16x2xf32>
    %401 = tpu.matmul %400, %399, %cst_107 {dimension_numbers = #tpu.dot_dimension_numbers<[1], [0], [0], [1], [0, 0, 1, 1], [], []>} : vector<16x16xf32>, vector<16x2xf32>, vector<16x2xf32> -> vector<16x2xf32>
    %c71 = arith.constant 71 : index
    %c0_108 = arith.constant 0 : index
    %402 = vector.load %arg5[%c71, %c0_108] : memref<293x36xf32, #tpu.memory_space<vmem>>, vector<16x1xf32>
    %403 = vector.broadcast %402 : vector<16x1xf32> to vector<16x2xf32>
    %404 = arith.addf %401, %403 : vector<16x2xf32>
    %cst_109 = arith.constant 0.000000e+00 : f32
    %405 = vector.broadcast %cst_109 : f32 to vector<16x2xf32>
    %406 = arith.maximumf %404, %405 : vector<16x2xf32>
    %c87 = arith.constant 87 : index
    %c0_110 = arith.constant 0 : index
    %407 = vector.load %arg5[%c87, %c0_110] : memref<293x36xf32, #tpu.memory_space<vmem>>, vector<16x16xf32>
    %cst_111 = arith.constant dense<0.000000e+00> : vector<16x2xf32>
    %408 = tpu.matmul %407, %406, %cst_111 {dimension_numbers = #tpu.dot_dimension_numbers<[1], [0], [0], [1], [0, 0, 1, 1], [], []>} : vector<16x16xf32>, vector<16x2xf32>, vector<16x2xf32> -> vector<16x2xf32>
    %c103 = arith.constant 103 : index
    %c0_112 = arith.constant 0 : index
    %409 = vector.load %arg5[%c103, %c0_112] : memref<293x36xf32, #tpu.memory_space<vmem>>, vector<16x1xf32>
    %410 = vector.broadcast %409 : vector<16x1xf32> to vector<16x2xf32>
    %411 = arith.addf %408, %410 : vector<16x2xf32>
    %c119_113 = arith.constant 119 : index
    %c0_114 = arith.constant 0 : index
    %412 = vector.load %arg5[%c119_113, %c0_114] : memref<293x36xf32, #tpu.memory_space<vmem>>, vector<16x16xf32>
    %cst_115 = arith.constant dense<0.000000e+00> : vector<16x2xf32>
    %413 = tpu.matmul %412, %411, %cst_115 {dimension_numbers = #tpu.dot_dimension_numbers<[1], [0], [0], [1], [0, 0, 1, 1], [], []>} : vector<16x16xf32>, vector<16x2xf32>, vector<16x2xf32> -> vector<16x2xf32>
    %c135_116 = arith.constant 135 : index
    %c0_117 = arith.constant 0 : index
    %414 = vector.load %arg5[%c135_116, %c0_117] : memref<293x36xf32, #tpu.memory_space<vmem>>, vector<16x1xf32>
    %415 = vector.broadcast %414 : vector<16x1xf32> to vector<16x2xf32>
    %416 = arith.addf %413, %415 : vector<16x2xf32>
    %cst_118 = arith.constant 0.000000e+00 : f32
    %417 = vector.broadcast %cst_118 : f32 to vector<16x2xf32>
    %418 = arith.maximumf %416, %417 : vector<16x2xf32>
    %c151 = arith.constant 151 : index
    %c0_119 = arith.constant 0 : index
    %419 = vector.load %arg5[%c151, %c0_119] : memref<293x36xf32, #tpu.memory_space<vmem>>, vector<16x16xf32>
    %cst_120 = arith.constant dense<0.000000e+00> : vector<16x2xf32>
    %420 = tpu.matmul %419, %418, %cst_120 {dimension_numbers = #tpu.dot_dimension_numbers<[1], [0], [0], [1], [0, 0, 1, 1], [], []>} : vector<16x16xf32>, vector<16x2xf32>, vector<16x2xf32> -> vector<16x2xf32>
    %c167 = arith.constant 167 : index
    %c0_121 = arith.constant 0 : index
    %421 = vector.load %arg5[%c167, %c0_121] : memref<293x36xf32, #tpu.memory_space<vmem>>, vector<16x1xf32>
    %422 = vector.broadcast %421 : vector<16x1xf32> to vector<16x2xf32>
    %423 = arith.addf %420, %422 : vector<16x2xf32>
    %cst_122 = arith.constant 0.000000e+00 : f32
    %424 = vector.broadcast %cst_122 : f32 to vector<16x2xf32>
    %425 = arith.maximumf %423, %424 : vector<16x2xf32>
    %c183 = arith.constant 183 : index
    %c0_123 = arith.constant 0 : index
    %426 = vector.load %arg5[%c183, %c0_123] : memref<293x36xf32, #tpu.memory_space<vmem>>, vector<16x16xf32>
    %cst_124 = arith.constant dense<0.000000e+00> : vector<16x2xf32>
    %427 = tpu.matmul %426, %425, %cst_124 {dimension_numbers = #tpu.dot_dimension_numbers<[1], [0], [0], [1], [0, 0, 1, 1], [], []>} : vector<16x16xf32>, vector<16x2xf32>, vector<16x2xf32> -> vector<16x2xf32>
    %c199 = arith.constant 199 : index
    %c0_125 = arith.constant 0 : index
    %428 = vector.load %arg5[%c199, %c0_125] : memref<293x36xf32, #tpu.memory_space<vmem>>, vector<16x1xf32>
    %429 = vector.broadcast %428 : vector<16x1xf32> to vector<16x2xf32>
    %430 = arith.addf %427, %429 : vector<16x2xf32>
    %cst_126 = arith.constant 0.000000e+00 : f32
    %431 = vector.broadcast %cst_126 : f32 to vector<16x2xf32>
    %432 = arith.maximumf %430, %431 : vector<16x2xf32>
    %c215 = arith.constant 215 : index
    %c0_127 = arith.constant 0 : index
    %433 = vector.load %arg5[%c215, %c0_127] : memref<293x36xf32, #tpu.memory_space<vmem>>, vector<16x16xf32>
    %cst_128 = arith.constant dense<0.000000e+00> : vector<16x2xf32>
    %434 = tpu.matmul %433, %432, %cst_128 {dimension_numbers = #tpu.dot_dimension_numbers<[1], [0], [0], [1], [0, 0, 1, 1], [], []>} : vector<16x16xf32>, vector<16x2xf32>, vector<16x2xf32> -> vector<16x2xf32>
    %c231 = arith.constant 231 : index
    %c0_129 = arith.constant 0 : index
    %435 = vector.load %arg5[%c231, %c0_129] : memref<293x36xf32, #tpu.memory_space<vmem>>, vector<16x1xf32>
    %436 = vector.broadcast %435 : vector<16x1xf32> to vector<16x2xf32>
    %437 = arith.addf %434, %436 : vector<16x2xf32>
    %cst_130 = arith.constant 0.000000e+00 : f32
    %438 = vector.broadcast %cst_130 : f32 to vector<16x2xf32>
    %439 = arith.maximumf %437, %438 : vector<16x2xf32>
    %c247 = arith.constant 247 : index
    %c0_131 = arith.constant 0 : index
    %440 = vector.load %arg5[%c247, %c0_131] : memref<293x36xf32, #tpu.memory_space<vmem>>, vector<3x16xf32>
    %cst_132 = arith.constant dense<0.000000e+00> : vector<3x2xf32>
    %441 = tpu.matmul %440, %439, %cst_132 {dimension_numbers = #tpu.dot_dimension_numbers<[1], [0], [0], [1], [0, 0, 1, 1], [], []>} : vector<3x16xf32>, vector<16x2xf32>, vector<3x2xf32> -> vector<3x2xf32>
    %c250 = arith.constant 250 : index
    %c0_133 = arith.constant 0 : index
    %442 = vector.load %arg5[%c250, %c0_133] : memref<293x36xf32, #tpu.memory_space<vmem>>, vector<3x1xf32>
    %443 = vector.broadcast %442 : vector<3x1xf32> to vector<3x2xf32>
    %444 = arith.addf %441, %443 : vector<3x2xf32>
    %c0_134 = arith.constant 0 : index
    %c0_135 = arith.constant 0 : index
    %445 = vector.load %arg6[%c0_134, %c0_135] : memref<3x2xf32, #tpu.memory_space<vmem>>, vector<3x2xf32>
    tpu.vector_store %arg6[%c0_134, %c0_135], %444 {strides = array<i32>} : memref<3x2xf32, #tpu.memory_space<vmem>>, vector<3x2xf32>,
    return
  }
}

</mosaic_0001>

<bundles_post_ra>
// kernel: img_only_forward.1
= control target key start
LH: loop header
LB: loop body
LE: loop exit
PB: predicated region body
PF: predicated region fallthrough
CT: control target
= control target key end

     0   :  { %v51_v0 = vlaneseq  ;;  %v3345_v1 = vmov 0.0   ;;  %s3346_s29 = smov 113   ;;  %s4379_s30 = smov 112   ;;  %vm94_vm0 = vcmask 916480   ;;  %vm141_vm1 = vcmask 924672   ;;  %s4360_s3 = inlined_call_operand.vmem [shape: f32[36,256], index: 3, kind: input, shape index: {}]   ;;  %s4361_s5 = inlined_call_operand.vmem [shape: f32[293,36], index: 5, kind: input, shape index: {}]   ;;  %s4362_s0 = inlined_call_operand.vmem [shape: f32[2,256], index: 0, kind: input, shape index: {}]   ;;  %s4363_s1 = inlined_call_operand.vmem [shape: bf16[256,64], index: 1, kind: input, shape index: {}]   ;;  %s4364_s2 = inlined_call_operand.vmem [shape: bf16[64,16], index: 2, kind: input, shape index: {}]   ;;  %s4365_s4 = inlined_call_operand.vmem [shape: f32[16,72], index: 4, kind: input, shape index: {}]   ;;  %s4366_s6 = inlined_call_operand.vmem [shape: f32[3,2], index: 6, kind: output, shape index: {}]  }
   0x1   :  { %4398 = sst [smem:[#allocation11_spill]] %s4360_s3  ;;  %24 = vst [vmem:[#allocation2 + $0x8] sm:$0xff] %v3345_v1  ;;  %25 = vst [vmem:[#allocation2 + $0x10] sm:$0xff] %v3345_v1  ;;  %v31_v3 = vld [vmem:[%s4361_s5] sm:$0xff]  ;;  %v3431_v11 = vld [vmem:[%s4360_s3 + $0x8] sm:$0xff]  ;;  %s4392_s8 = smov 127  }
   0x2   :  { %4399 = sst [smem:[#allocation12_spill]] %s4361_s5  ;;  %23 = vst [vmem:[#allocation2] sm:$0xff] %v3345_v1  ;;  %26 = vst [vmem:[#allocation2 + $0x18] sm:$0xff] %v3345_v1  ;;  %v3412_v2 = vshrl.u32 %v51_v0, 7  ;;  %v3420_v4 = vld [vmem:[%s4360_s3] sm:$0xff]  ;;  %v102_v5 = vrot.slane %v31_v3, 1 }
   0x3   :  { %4400 = sst [smem:[#allocation13_spill]] %s4364_s2  ;;  %3130 = vpush %v31_v3  ;;  %v149_v6 = vrot.slane %v31_v3, 2  ;;  %v195_v7 = vrot.slane %v31_v3, 3  ;;  %v229_v10 = vrot.slane %v31_v3, 4  ;;  %v273_v12 = vrot.slane %v31_v3, 5  ;;  %s4369_s9 = smov 1  }
   0x4   :  { %4401 = sst [smem:[#allocation14_spill]] %s4365_s4  ;;  %v3423_v8 = vsub.s32 2, %v3412_v2  ;;  %v3426_v9 = vsub.s32 1, %v3412_v2  ;;  %3132 = vpush %v102_v5  ;;  %v3446_v18 = vsub.s32 3, %v3412_v2  ;;  %v320_v19 = vrot.slane %v31_v3, 6  ;;  %s3350_s10 = smov 15  }
   0x5   :  { %4402 = sst [smem:[#allocation15_spill]] %s4366_s6  ;;  %3134 = vpush %v149_v6  ;;  %v2695_v15 = vld.sshfl [vmem:[%s4362_s0] sm:$0x33 pattern:$0x76325410]  ;;  %v367_v20 = vrot.slane %v31_v3, 7 }
   0x6   :  { %v130_v13 = vrot.slane %v3420_v4, %v3423_v8  ;;  %v83_v14 = vrot.slane %v3420_v4, %v3426_v9  ;;  %3136 = vpush %v195_v7  ;;  %46 = vst [vmem:[#allocation2 + $0x8] sm:$0x3] %v2695_v15  ;;  %v134_v16 = vrot.slane %v3431_v11, %v3423_v8  ;;  %v32_v21 = vld [vmem:[%s4361_s5 + $0x8] sm:$0x1]  ;;  %v3457_v25 = vsub.s32 5, %v3412_v2  ;;  %s4371_s11 = smov 16  }
   0x7   :  { %v87_v17 = vrot.slane %v3431_v11, %v3426_v9  ;;  %3138 = vpush %v229_v10  ;;  %v43_v22 = vcombine.high %v2695_v15, %v2695_v15  ;;  %v181_v23 = vrot.slane %v3431_v11, %v3446_v18  ;;  %v177_v24 = vrot.slane %v3420_v4, %v3446_v18  ;;  %v2697_v35 = vld [vmem:[%s4360_s3 + $0x18] ss:$0 sm:$0xff]  ;;  %v2696_v36 = vld [vmem:[%s4360_s3 + $0x10] ss:$0 sm:$0xff]  ;;  %s3352_s16 = smov 17   ;;  %s4377_s17 = smov 111  }
   0x8   :  { %137 = vrot.lane.b32.xlu1 %v130_v13, %s3346_s29  ;;  %90 = vrot.lane.b32.xlu0 %v83_v14, %s4379_s30  ;;  %3140 = vpush %v273_v12  ;;  %v258_v26 = vrot.slane %v3431_v11, %v3457_v25  ;;  %v254_v27 = vrot.slane %v3420_v4, %v3457_v25  ;;  %v3466_v28 = vsub.s32 6, %v3412_v2  ;;  %v3475_v31 = vsub.s32 7, %v3412_v2  ;;  %v33_v39 = vld [vmem:[%s4361_s5 + $0x9] sm:$0x1]  ;;  %s4385_s25 = smov 126   ;;  %s4375_s0 = smov 110  }
   0x9   :  { %3142 = vpush %v320_v19  ;;  %47 = vst [vmem:[#allocation2 + $0x10] sm:$0x3] %v43_v22  ;;  %v3484_v34 = vsub.s32 0, %v3412_v2  ;;  %v3504_v40 = vsub.s32 4, %v3412_v2  ;;  %v3520_v50 = vld [vmem:[#allocation2] sm:$0x3] }
   0xa   :  { %3144 = vpush %v367_v20  ;;  %v305_v29 = vrot.slane %v3431_v11, %v3466_v28  ;;  %v301_v30 = vrot.slane %v3420_v4, %v3466_v28  ;;  %v352_v32 = vrot.slane %v3431_v11, %v3475_v31  ;;  %v348_v33 = vrot.slane %v3420_v4, %v3475_v31  ;;  %v3545_v14 = vld [vmem:[#allocation2 + $0x18] sm:$0x3]  ;;  %s3358_s12 = smov 94  }
   0xb   :  { %3146 = vpush %v32_v21  ;;  %v58_v37 = vrot.slane %v3431_v11, %v3484_v34  ;;  %v54_v38 = vrot.slane %v3420_v4, %v3484_v34  ;;  %v222_v41 = vrot.slane %v3420_v4, %v3504_v40  ;;  %v226_v42 = vrot.slane %v3431_v11, %v3504_v40 }
   0xc   :  { %139 = vrot.lane.b32.xlu1 %v134_v16, %s3346_s29  ;;  %92 = vrot.lane.b32.xlu0 %v87_v17, %s4379_s30  ;;  %3148 = vpush %v33_v39  ;;  %s3355_s29 = smov 96   ;;  %vm118_vm2 = vcmask 1039360   ;;  %vm265_vm3 = vcmask 7168   ;;  %vm312_vm4 = vcmask 121856   ;;  %vm359_vm5 = vcmask 130048  }
   0xd   :  { %v3512_v43 = vld [vmem:[#allocation2 + $0x8] sm:$0x3]  ;;  %vm406_vm6 = vcmask 138240   ;;  %vm65_vm7 = vcmask 908288   ;;  %vm165_vm8 = vcmask 1031168   ;;  %vm289_vm9 = vcmask 900096  }
   0xe   :  { %v227_v45 = vmul.f32 %v222_v41, %v3512_v43  ;;  %v248_v11 = vld [vmem:[#allocation2 + $0x8] sm:$0x3]  ;;  %vm336_vm10 = vcmask 785408   ;;  %vm383_vm11 = vcmask 777216   ;;  %vm430_vm12 = vcmask 769024  }
   0xf   :  { %vm601_vm13 = vcmask 517120   ;;  %vm738_vm14 = vcmask 982016   ;;  %vm1212_vm15 = vcmask 1041408  }
  0x10   :  { %186 = vrot.lane.b32.xlu1 %v181_v23, %s4392_s8  ;;  %184 = vrot.lane.b32.xlu0 %v177_v24, %s4392_s8  ;;  %v3514_v44 = vld [vmem:[#allocation2 + $0x10] sm:$0x3] }
  0x11   :  { %v228_v46 = vmul.f32 %v226_v42, %v3514_v44 }
  0x14   :  { %263 = vrot.lane.b32.xlu1 %v258_v26, %s4369_s9  ;;  %261 = vrot.lane.b32.xlu0 %v254_v27, %s4369_s9 }
  0x18   :  { %310 = vrot.lane.b32.xlu1 %v305_v29, %s3350_s10  ;;  %308 = vrot.lane.b32.xlu0 %v301_v30, %s3350_s10  ;;  %s3357_s10 = smov 95  }
  0x1c   :  { %357 = vrot.lane.b32.xlu1 %v352_v32, %s4371_s11  ;;  %355 = vrot.lane.b32.xlu0 %v348_v33, %s4371_s11 }
  0x20   :  { %404 = vrot.lane.b32.xlu1 %v2697_v35, %s3352_s16  ;;  %402 = vrot.lane.b32.xlu0 %v2696_v36, %s3352_s16 }
  0x24   :  { %63 = vrot.lane.b32.xlu1 %v58_v37, %s4377_s17  ;;  %61 = vrot.lane.b32.xlu0 %v54_v38, %s4377_s17 }
  0x34   :  { %s3510_s20 = spop %3130 }
  0x35   :  { %s3133_s21 = spop %3132 }
  0x36   :  { %s3135_s22 = spop %3134  ;;  %v3522_v51 = vstv %s3133_s21  ;;  %s4383_s21 = smov 120  }
  0x37   :  { %s3137_s23 = spop %3136  ;;  %v3529_v60 = vstv %s3135_s22 }
  0x38   :  { %s3139_s24 = spop %3138  ;;  %v3537_v3 = vstv %s3137_s23 }
  0x39   :  { %v231_v47 = vstv %s3139_s24  ;;  %s3141_s26 = spop %3140  ;;  %s3361_s24 = smov 121  }
  0x3a   :  { %v233_v48 = vmul.f32 %v231_v47, %v227_v45  ;;  %v234_v49 = vmul.f32 %v231_v47, %v228_v46  ;;  %s3143_s27 = spop %3142  ;;  %v3547_v15 = vstv %s3141_s26  ;;  %s3362_s26 = smov 7  }
  0x3b   :  { %v3549_v19 = vstv %s3143_s27  ;;  %s3145_s28 = spop %3144  ;;  %s4373_s27 = smov 9  }
  0x3c   :  { %239 = vrot.lane.b32.xlu0 %v234_v49, %s4377_s17  ;;  %237 = vrot.lane.b32.xlu1 %v233_v48, %s4377_s17  ;;  %v369_v30 = vstv %s3145_s28  ;;  %s3147_s7 = spop %3146  ;;  %s3364_s28 = smov 8  }
  0x3d   :  { %v416_v41 = vstv %s3147_s7 }
  0x7a   :  { %v138_v52 = vpop.permute.xlu1 %137  ;;  %v91_v53 = vpop.permute.xlu0 %90 }
  0x7b   :  { %v99_v54 = vmul.f32 %v91_v53, %v3520_v50  ;;  %v146_v61 = vmul.f32 %v138_v52, %v3520_v50 }
  0x7d   :  { %v106_v55 = vmul.f32 %v3522_v51, %v99_v54  ;;  %v153_v6 = vmul.f32 %v3529_v60, %v146_v61 }
  0x7e   :  { %v140_v56 = vpop.permute.xlu1 %139  ;;  %v93_v57 = vpop.permute.xlu0 %92 }
  0x7f   :  { %v148_v58 = vmul.f32 %v140_v56, %v3514_v44  ;;  %v101_v59 = vmul.f32 %v93_v57, %v3514_v44  ;;  %112 = vrot.lane.b32.xlu0 %v106_v55, %s4392_s8  ;;  %v95_v26 = vsel %vm94_vm0, %v91_v53, %v93_v57  ;;  %v142_v36 = vsel %vm141_vm1, %v138_v52, %v140_v56  ;;  %v249_v57 = vld [vmem:[#allocation2 + $0x10] sm:$0x3] }
  0x80   :  { %v100_v32 = vmul.f32 %v95_v26, %v3512_v43  ;;  %v147_v42 = vmul.f32 %v142_v36, %v3512_v43  ;;  %v3574_v53 = vstv %s3510_s20  ;;  %v2811_v26 = vld [vmem:[%s4363_s1 + $0x68] sm:$0xff]   ;;  %vm1215_vm1 = vcmask 1043456  }
  0x81   :  { %v155_v62 = vmul.f32 %v3529_v60, %v148_v58  ;;  %v108_v63 = vmul.f32 %v3522_v51, %v101_v59 }
  0x82   :  { %v187_v0 = vpop.permute.xlu1 %186  ;;  %v185_v1 = vpop.permute.xlu0 %184  ;;  %v107_v45 = vmul.f32 %v3522_v51, %v100_v32  ;;  %v154_v56 = vmul.f32 %v3529_v60, %v147_v42 }
  0x83   :  { %v192_v2 = vmul.f32 %v185_v1, %v3520_v50  ;;  %163 = vrot.lane.b32.xlu0 %v155_v62, %s4385_s25  ;;  %116 = vrot.lane.b32.xlu1 %v108_v63, %s4392_s8  ;;  %v194_v4 = vmul.f32 %v187_v0, %v3514_v44  ;;  %v188_v46 = vsel %vm118_vm2, %v185_v1, %v187_v0 }
  0x84   :  { %v193_v51 = vmul.f32 %v188_v46, %v3512_v43 }
  0x85   :  { %v199_v5 = vmul.f32 %v3537_v3, %v192_v2  ;;  %v201_v13 = vmul.f32 %v3537_v3, %v194_v4 }
  0x86   :  { %v264_v7 = vpop.permute.xlu1 %263  ;;  %v262_v10 = vpop.permute.xlu0 %261  ;;  %v200_v0 = vmul.f32 %v3537_v3, %v193_v51 }
  0x87   :  { %205 = vrot.lane.b32.xlu0 %v199_v5, %s4379_s30  ;;  %159 = vrot.lane.b32.xlu1 %v153_v6, %s4385_s25  ;;  %v270_v12 = vmul.f32 %v262_v10, %v248_v11  ;;  %v272_v21 = vmul.f32 %v264_v7, %v3545_v14  ;;  %v266_v58 = vsel %vm265_vm3, %v262_v10, %v264_v7  ;;  %vm1218_vm3 = vcmask 1045504  }
  0x88   :  { %v271_v59 = vmul.f32 %v266_v58, %v249_v57 }
  0x89   :  { %v277_v22 = vmul.f32 %v3547_v15, %v270_v12  ;;  %v279_v33 = vmul.f32 %v3547_v15, %v272_v21  ;;  %v2806_v12 = vld [vmem:[%s4363_s1 + $0x40] sm:$0xff]   ;;  %v2809_v21 = vld [vmem:[%s4363_s1 + $0x58] sm:$0xff]  }
  0x8a   :  { %v311_v16 = vpop.permute.xlu1 %310  ;;  %v309_v17 = vpop.permute.xlu0 %308  ;;  %v278_v2 = vmul.f32 %v3547_v15, %v271_v59  ;;  %3032 = vmatprep.subr.bf16.mxu0 %v2806_v12 }
  0x8b   :  { %v317_v20 = vmul.f32 %v309_v17, %v248_v11  ;;  %209 = vrot.lane.b32.xlu1 %v201_v13, %s4379_s30  ;;  %v319_v23 = vmul.f32 %v311_v16, %v3545_v14  ;;  %v2720_v13 = vld [vmem:[%s4363_s1] sm:$0xff]  }
  0x8c   :  { %3034 = vmatpush3.bf16.msra.mxu0 %v2720_v13 }
  0x8d   :  { %v324_v24 = vmul.f32 %v3549_v19, %v317_v20  ;;  %v326_v35 = vmul.f32 %v3549_v19, %v319_v23  ;;  %v2800_v20 = vld [vmem:[%s4363_s1 + $0x10] sm:$0xff]   ;;  %v2810_v23 = vld [vmem:[%s4363_s1 + $0x60] sm:$0xff]  }
  0x8e   :  { %v356_v27 = vpop.permute.xlu0 %355  ;;  %v358_v48 = vpop.permute.xlu1 %357 }
  0x8f   :  { %v364_v29 = vmul.f32 %v356_v27, %v248_v11  ;;  %330 = vrot.lane.b32.xlu0 %v324_v24, %s3355_s29  ;;  %283 = vrot.lane.b32.xlu1 %v277_v22, %s4375_s0  ;;  %v366_v54 = vmul.f32 %v358_v48, %v3545_v14  ;;  %v360_v1 = vsel %vm359_vm5, %v356_v27, %v358_v48  ;;  %v2801_v22 = vld [vmem:[%s4363_s1 + $0x18] sm:$0xff]   ;;  %v2802_v24 = vld [vmem:[%s4363_s1 + $0x20] sm:$0xff]  }
  0x90   :  { %v365_v5 = vmul.f32 %v360_v1, %v249_v57  ;;  %v2803_v27 = vld [vmem:[%s4363_s1 + $0x28] sm:$0xff]  }
  0x91   :  { %v371_v39 = vmul.f32 %v369_v30, %v364_v29  ;;  %v373_v63 = vmul.f32 %v369_v30, %v366_v54 }
  0x92   :  { %v403_v37 = vpop.permute.xlu0 %402  ;;  %v405_v62 = vpop.permute.xlu1 %404  ;;  %v372_v7 = vmul.f32 %v369_v30, %v365_v5 }
  0x93   :  { %v411_v38 = vmul.f32 %v403_v37, %v248_v11  ;;  %334 = vrot.lane.b32.xlu0 %v326_v35, %s3355_s29  ;;  %287 = vrot.lane.b32.xlu1 %v279_v33, %s4375_s0  ;;  %v407_v60 = vsel %vm406_vm6, %v403_v37, %v405_v62  ;;  %v413_v3 = vmul.f32 %v405_v62, %v3545_v14  ;;  %v3599_v11 = vld [vmem:[%s4361_s5 + $0xa] sm:$0xff] }
  0x94   :  { %v412_v6 = vmul.f32 %v407_v60, %v249_v57  ;;  %v2807_v14 = vld [vmem:[%s4363_s1 + $0x48] sm:$0xff]   ;;  %v3611_v15 = vrot.slane %v3599_v11, 1  ;;  %3150 = vpush %v3599_v11 }
  0x95   :  { %v418_v52 = vmul.f32 %v416_v41, %v411_v38  ;;  %3036 = vmatprep.subr.bf16.mxu0 %v2807_v14 }
  0x96   :  { %v3567_v47 = vpop.permute.xlu0 %61  ;;  %v419_v10 = vmul.f32 %v416_v41, %v412_v6  ;;  %3152 = vpush %v3611_v15  ;;  %v64_v29 = vpop.permute.xlu1 %63 }
  0x97   :  { %v70_v49 = vmul.f32 %v3567_v47, %v3520_v50  ;;  %114 = vrot.lane.b32.xlu0 %v107_v45, %s4392_s8  ;;  %377 = vrot.lane.b32.xlu1 %v371_v39, %s3357_s10  ;;  %v313_v50 = vsel %vm312_vm4, %v309_v17, %v311_v16  ;;  %v420_v16 = vmul.f32 %v416_v41, %v413_v3  ;;  %v2799_v17 = vld [vmem:[%s4363_s1 + $0x8] sm:$0xff]   ;;  %vm1243_vm4 = vcmask 72704  }
  0x98   :  { %v318_v61 = vmul.f32 %v313_v50, %v249_v57  ;;  %3038 = vmatpush3.bf16.msra.mxu0 %v2799_v17  ;;  %v72_v45 = vmul.f32 %v64_v29, %v3514_v44  ;;  %v2812_v17 = vld [vmem:[%s4363_s1 + $0x70] sm:$0xff]  }
  0x99   :  { %v3579_v55 = vmul.f32 %v3574_v53, %v70_v49  ;;  %v66_v49 = vsel %vm65_vm7, %v3567_v47, %v64_v29 }
  0x9a   :  { %v325_v4 = vmul.f32 %v3549_v19, %v318_v61  ;;  %v2808_v19 = vld [vmem:[%s4363_s1 + $0x50] sm:$0xff]   ;;  %v79_v51 = vmul.f32 %v3574_v53, %v72_v45  ;;  %v2805_v45 = vld [vmem:[%s4363_s1 + $0x38] sm:$0xff]  }
  0x9b   :  { %424 = vrot.lane.b32.xlu0 %v418_v52, %s3358_s12  ;;  %161 = vrot.lane.b32.xlu1 %v154_v56, %s4385_s25  ;;  %v71_v52 = vmul.f32 %v66_v49, %v3512_v43  ;;  %v744_v49 = vrot.slane %v3599_v11, 4 }
  0x9c   :  { %3040 = vmatprep.subr.bf16.mxu0 %v2808_v19  ;;  %v2804_v19 = vld [vmem:[%s4363_s1 + $0x30] sm:$0xff]  }
  0x9d   :  { %3042 = vmatpush3.bf16.msra.mxu0 %v2800_v20  ;;  %v78_v59 = vmul.f32 %v3574_v53, %v71_v52  ;;  %v3664_v20 = vrot.slane %v3599_v11, 2 }
  0x9e   :  { %3044 = vmatprep.subr.bf16.mxu0 %v2809_v21 }
  0x9f   :  { %207 = vrot.lane.b32.xlu0 %v200_v0, %s4379_s30  ;;  %381 = vrot.lane.b32.xlu1 %v373_v63, %s3357_s10  ;;  %3154 = vpush %v3664_v20 }
  0xa1   :  { %3046 = vmatpush3.bf16.msra.mxu0 %v2801_v22 }
  0xa2   :  { %3048 = vmatprep.subr.bf16.mxu0 %v2810_v23  ;;  %v3667_v23 = vrot.slane %v3599_v11, 3 }
  0xa3   :  { %285 = vrot.lane.b32.xlu0 %v278_v2, %s4375_s0  ;;  %332 = vrot.lane.b32.xlu1 %v325_v4, %s3355_s29  ;;  %s3149_s29 = spop %3148 }
  0xa4   :  { %3156 = vpush %v3667_v23 }
  0xa5   :  { %3050 = vmatpush3.bf16.msra.mxu0 %v2802_v24  ;;  %3158 = vpush %v744_v49 }
  0xa6   :  { %3052 = vmatprep.subr.bf16.mxu0 %v2811_v26 }
  0xa7   :  { %379 = vrot.lane.b32.xlu0 %v372_v7, %s3357_s10  ;;  %426 = vrot.lane.b32.xlu1 %v419_v10, %s3358_s12 }
  0xa9   :  { %3054 = vmatpush3.bf16.msra.mxu0 %v2803_v27 }
  0xaa   :  { %3056 = vmatprep.subr.bf16.mxu0 %v2812_v17 }
  0xab   :  { %428 = vrot.lane.b32.xlu0 %v420_v16, %s3358_s12 }
  0xad   :  { %3058 = vmatpush3.bf16.msra.mxu0 %v2804_v19 }
  0xae   :  { %v240_v30 = vpop.permute.xlu0 %239  ;;  %v238_v32 = vpop.permute.xlu1 %237 }
  0xaf   :  { %v241_v10 = vsel %vm65_vm7, %v238_v32, %v240_v30  ;;  %vm1318_vm7 = vcmask 122880  }
  0xc5   :  { %s3765_s7 = spop %3150 }
  0xc7   :  { %s3768_s10 = spop %3152 }
  0xd0   :  { %s3770_s12 = spop %3154 }
  0xd5   :  { %s3772_s13 = spop %3156 }
  0xf1   :  { %v113_v33 = vpop.permute.xlu0 %112 }
  0xf5   :  { %v117_v35 = vpop.permute.xlu1 %116  ;;  %v164_v36 = vpop.permute.xlu0 %163 }
  0xf6   :  { %v126_v57 = vadd.f32 %v117_v35, %v79_v51  ;;  %v755_v51 = vrot.slane %v3599_v11, 5 }
  0xf8   :  { %v173_v63 = vadd.f32 %v164_v36, %v126_v57  ;;  %3160 = vpush %v755_v51 }
  0xf9   :  { %v160_v37 = vpop.permute.xlu1 %159  ;;  %v206_v38 = vpop.permute.xlu0 %205 }
  0xfd   :  { %v210_v39 = vpop.permute.xlu1 %209 }
  0xfe   :  { %v218_v1 = vadd.f32 %v210_v39, %v173_v63  ;;  %v777_v63 = vrot.slane %v3599_v11, 7 }
 0x100   :  { %v247_v12 = vadd.f32 %v240_v30, %v218_v1  ;;  %v599_v1 = vld [vmem:[%s4361_s5 + $0x12] sm:$0x1] }
 0x101   :  { %v331_v41 = vpop.permute.xlu0 %330  ;;  %v284_v42 = vpop.permute.xlu1 %283 }
 0x105   :  { %v335_v46 = vpop.permute.xlu0 %334  ;;  %v288_v48 = vpop.permute.xlu1 %287 }
 0x109   :  { %v115_v54 = vpop.permute.xlu0 %114  ;;  %v378_v56 = vpop.permute.xlu1 %377 }
 0x10a   :  { %v119_v58 = vsel %vm118_vm2, %v113_v33, %v115_v54  ;;  %v120_v50 = vsel %vm118_vm2, %v115_v54, %v117_v35 }
 0x10b   :  { %v124_v43 = vadd.f32 %v119_v58, %v3579_v55  ;;  %v125_v0 = vadd.f32 %v120_v50, %v78_v59 }
 0x10d   :  { %v425_v44 = vpop.permute.xlu0 %424  ;;  %v162_v61 = vpop.permute.xlu1 %161 }
 0x10e   :  { %v166_v62 = vsel %vm165_vm8, %v160_v37, %v162_v61  ;;  %v167_v47 = vsel %vm165_vm8, %v162_v61, %v164_v36  ;;  %v766_v61 = vrot.slane %v3599_v11, 6 }
 0x10f   :  { %v171_v60 = vadd.f32 %v166_v62, %v124_v43  ;;  %v172_v2 = vadd.f32 %v167_v47, %v125_v0 }
 0x110   :  { %3162 = vpush %v766_v61 }
 0x111   :  { %v208_v4 = vpop.permute.xlu0 %207  ;;  %v382_v5 = vpop.permute.xlu1 %381  ;;  %3164 = vpush %v777_v63 }
 0x112   :  { %v211_v6 = vsel %vm94_vm0, %v206_v38, %v208_v4  ;;  %v212_v3 = vsel %vm94_vm0, %v208_v4, %v210_v39  ;;  %v2813_v38 = vld [vmem:[%s4363_s1 + $0x78] sm:$0xff]   ;;  %3166 = vpush %v599_v1  ;;  %v3702_v4 = vld [vmem:[%s4361_s5 + $0x13] sm:$0xf]  ;;  %s3774_s1 = spop %3158  ;;  %vm3368_vm0 = vmmov 0  }
 0x113   :  { %v216_v53 = vadd.f32 %v211_v6, %v171_v60  ;;  %v217_v7 = vadd.f32 %v212_v3, %v172_v2  ;;  %3060 = vmatprep.subr.bf16.mxu0 %v2813_v38  ;;  %3168 = vpush %v3702_v4 }
 0x114   :  { %3062 = vmatpush3.bf16.msra.mxu0 %v2805_v45 }
 0x115   :  { %v245_v13 = vadd.f32 %v238_v32, %v216_v53  ;;  %v286_v14 = vpop.permute.xlu0 %285  ;;  %v246_v55 = vadd.f32 %v241_v10, %v217_v7  ;;  %v333_v16 = vpop.permute.xlu1 %332  ;;  %v597_v53 = vld [vmem:[%s4360_s3 + $0x20] sm:$0x3] }
 0x116   :  { %v290_v21 = vsel %vm289_vm9, %v284_v42, %v286_v14  ;;  %v291_v22 = vsel %vm289_vm9, %v286_v14, %v288_v48  ;;  %v337_v29 = vsel %vm336_vm10, %v331_v41, %v333_v16  ;;  %v338_v30 = vsel %vm336_vm10, %v333_v16, %v335_v46 }
 0x117   :  { %v295_v24 = vadd.f32 %v284_v42, %v245_v13  ;;  %v296_v26 = vadd.f32 %v290_v21, %v246_v55  ;;  %v297_v27 = vadd.f32 %v291_v22, %v247_v12  ;;  %v680_v10 = vrot.slane %v597_v53, %v3426_v9 }
 0x118   :  { %v671_v12 = vrot.slane %v597_v53, %v3484_v34  ;;  %vm1325_vm9 = vcmask 254080   ;;  %vm1464_vm10 = vcmask 1014784  }
 0x119   :  { %v343_v32 = vadd.f32 %v337_v29, %v296_v26  ;;  %v344_v33 = vadd.f32 %v338_v30, %v297_v27  ;;  %v380_v35 = vpop.permute.xlu0 %379  ;;  %v427_v36 = vpop.permute.xlu1 %426  ;;  %v342_v37 = vadd.f32 %v331_v41, %v295_v24  ;;  %v441_v41 = vstv %s3149_s29  ;;  %s4381_s29 = smov 119  }
 0x11a   :  { %v384_v39 = vsel %vm383_vm11, %v378_v56, %v380_v35  ;;  %v385_v42 = vsel %vm383_vm11, %v380_v35, %v382_v5  ;;  %v431_v52 = vsel %vm430_vm12, %v425_v44, %v427_v36  ;;  %v3734_v5 = vld [vmem:[%s4360_s3 + $0x10] sm:$0xfe]  ;;  %s4408_s3 = smov 126   ;;  %vm1522_vm11 = vcmask 39936  }
 0x11b   :  { %v390_v46 = vadd.f32 %v384_v39, %v343_v32  ;;  %v389_v48 = vadd.f32 %v378_v56, %v342_v37  ;;  %v391_v54 = vadd.f32 %v385_v42, %v344_v33  ;;  %v628_v6 = vrot.slane %v3734_v5, %v3446_v18 }
 0x11c   :  { %v662_v3 = vrot.slane %v3734_v5, %v3475_v31  ;;  %v653_v7 = vrot.slane %v3734_v5, %v3466_v28  ;;  %v608_v13 = vrot.slane %v3734_v5, %v3426_v9  ;;  %v928_v33 = vrot.slane %v3702_v4, 1 }
 0x11d   :  { %v437_v57 = vadd.f32 %v431_v52, %v390_v46  ;;  %v436_v58 = vadd.f32 %v425_v44, %v389_v48  ;;  %v429_v50 = vpop.permute.xlu0 %428  ;;  %v1057_v48 = vrot.slane %v3702_v4, 2 }
 0x11e   :  { %v432_v59 = vsel %vm430_vm12, %v427_v36, %v429_v50  ;;  %vm1529_vm12 = vcmask 293888  }
 0x11f   :  { %v443_v62 = vadd.f32 %v441_v41, %v436_v58  ;;  %v444_v56 = vadd.f32 %v441_v41, %v437_v57  ;;  %v438_v47 = vadd.f32 %v432_v59, %v391_v54  ;;  %v603_v59 = vld [vmem:[#allocation2] sm:$0x3] }
 0x121   :  { %v446_v43 = vmax.f32 %v443_v62, 0.0  ;;  %v445_v0 = vadd.f32 %v441_v41, %v438_v47  ;;  %v447_v44 = vmax.f32 %v444_v56, 0.0 }
 0x123   :  { %v448_v60 = vmax.f32 %v445_v0, 0.0  ;;  %516 = vrot.lane.b32.xlu0 %v446_v43, %s3352_s16 }
 0x125   :  { %v3262_v2 = vpack.i.bf16 %v448_v60, %v447_v44  ;;  %v694_v44 = vstv %s3768_s10 }
 0x127   :  { %3263 = vrot.lane.b32.xlu1 %v3262_v2, %s3352_s16  ;;  %814 = vrot.lane.b32.xlu0 %v3611_v15, %s4392_s8  ;;  %s4367_s16 = smov 125  }
 0x129   :  { %s3776_s14 = spop %3160 }
 0x12b   :  { %807 = vrot.lane.b32.xlu1 %v3599_v11, %s4392_s8  ;;  %850 = vrot.lane.b32.xlu0 %v3667_v23, %s4392_s8 }
 0x12f   :  { %832 = vrot.lane.b32.xlu1 %v3664_v20, %s4392_s8  ;;  %880 = vrot.lane.b32.xlu0 %v755_v51, %s4392_s8 }
 0x133   :  { %868 = vrot.lane.b32.xlu1 %v744_v49, %s4392_s8  ;;  %904 = vrot.lane.b32.xlu0 %v777_v63, %s4392_s8 }
 0x137   :  { %892 = vrot.lane.b32.xlu1 %v766_v61, %s4392_s8  ;;  %936 = vrot.lane.b32.xlu0 %v3599_v11, %s4385_s25 }
 0x13b   :  { %916 = vrot.lane.b32.xlu1 %v599_v1, %s4392_s8  ;;  %961 = vrot.lane.b32.xlu0 %v3664_v20, %s4385_s25 }
 0x13f   :  { %943 = vrot.lane.b32.xlu1 %v3611_v15, %s4385_s25  ;;  %997 = vrot.lane.b32.xlu0 %v744_v49, %s4385_s25 }
 0x141   :  { %s3778_s15 = spop %3162 }
 0x142   :  { %s3780_s18 = spop %3164 }
 0x143   :  { %979 = vrot.lane.b32.xlu1 %v3667_v23, %s4385_s25  ;;  %1021 = vrot.lane.b32.xlu0 %v766_v61, %s4385_s25  ;;  %s3782_s19 = spop %3166 }
 0x144   :  { %s3786_s20 = spop %3168 }
 0x145   :  { %4403 = sst [smem:[#allocation3_spill]] %s3786_s20 }
 0x147   :  { %1009 = vrot.lane.b32.xlu1 %v755_v51, %s4385_s25  ;;  %1045 = vrot.lane.b32.xlu0 %v599_v1, %s4385_s25 }
 0x14b   :  { %1033 = vrot.lane.b32.xlu1 %v777_v63, %s4385_s25  ;;  %1072 = vrot.lane.b32.xlu0 %v3611_v15, %s4367_s16  ;;  %v638_v15 = vrot.slane %v3734_v5, %v3504_v40 }
 0x14f   :  { %1065 = vrot.lane.b32.xlu1 %v3599_v11, %s4367_s16  ;;  %1108 = vrot.lane.b32.xlu0 %v3667_v23, %s4367_s16  ;;  %v618_v11 = vrot.slane %v3734_v5, %v3423_v8 }
 0x153   :  { %1090 = vrot.lane.b32.xlu1 %v3664_v20, %s4367_s16  ;;  %1138 = vrot.lane.b32.xlu0 %v755_v51, %s4367_s16 }
 0x157   :  { %1126 = vrot.lane.b32.xlu1 %v744_v49, %s4367_s16  ;;  %1162 = vrot.lane.b32.xlu0 %v777_v63, %s4367_s16 }
 0x15b   :  { %1150 = vrot.lane.b32.xlu1 %v766_v61, %s4367_s16  ;;  %620 = vrot.lane.b32.xlu0 %v618_v11, %s4383_s21 }
 0x15f   :  { %1174 = vrot.lane.b32.xlu1 %v599_v1, %s4367_s16  ;;  %640 = vrot.lane.b32.xlu0 %v638_v15, %s4392_s8 }
 0x163   :  { %630 = vrot.lane.b32.xlu1 %v628_v6, %s3361_s24  ;;  %664 = vrot.lane.b32.xlu0 %v662_v3, %s3362_s26 }
 0x167   :  { %655 = vrot.lane.b32.xlu1 %v653_v7, %s4369_s9  ;;  %682 = vrot.lane.b32.xlu0 %v680_v10, %s4373_s27 }
 0x16b   :  { %673 = vrot.lane.b32.xlu1 %v671_v12, %s3364_s28 }
 0x16f   :  { %610 = vrot.lane.b32.xlu1 %v608_v13, %s4381_s29 }
 0x195   :  { %v517_v14 = vpop.permute.xlu0 %516 }
 0x199   :  { %v3264_v55 = vpop.permute.xlu1 %3263  ;;  %v815_v16 = vpop.permute.xlu0 %814 }
 0x19a   :  { %v3266_v17 = vunpack.i.h.bf16 %v3264_v55  ;;  %v3265_v19 = vunpack.i.l.bf16 %v3264_v55 }
 0x19c   :  { %v523_v20 = vsel %vm406_vm6, %v3265_v19, %v3266_v17  ;;  %v522_v21 = vsel %vm406_vm6, %v517_v14, %v3265_v19  ;;  %v711_v19 = vstv %s3770_s12  ;;  %s4417_s12 = smov 110   ;;  %vm1245_vm6 = vcmask 523264  }
 0x19d   :  { %590 = vmatprep.mubr.f32.mxu0 %v523_v20  ;;  %v808_v22 = vpop.permute.xlu1 %807  ;;  %v851_v23 = vpop.permute.xlu0 %850 }
 0x19e   :  { %591 = vmatmul.mubr.f32.vlgmr.msra.gmra.mrb[0].mxu0 %v522_v21  ;;  %3170 = vpush %v808_v22 }
 0x19f   :  { %3172 = vpush %v815_v16 }
 0x1a1   :  { %v833_v24 = vpop.permute.xlu1 %832  ;;  %v881_v26 = vpop.permute.xlu0 %880 }
 0x1a2   :  { %3174 = vpush %v833_v24 }
 0x1a3   :  { %3176 = vpush %v851_v23 }
 0x1a5   :  { %v869_v27 = vpop.permute.xlu1 %868  ;;  %v905_v29 = vpop.permute.xlu0 %904 }
 0x1a6   :  { %3178 = vpush %v869_v27 }
 0x1a7   :  { %3180 = vpush %v881_v26 }
 0x1a9   :  { %v893_v30 = vpop.permute.xlu1 %892  ;;  %v937_v32 = vpop.permute.xlu0 %936 }
 0x1aa   :  { %3182 = vpush %v893_v30 }
 0x1ab   :  { %3184 = vpush %v905_v29 }
 0x1ad   :  { %v917_v35 = vpop.permute.xlu1 %916  ;;  %v962_v36 = vpop.permute.xlu0 %961 }
 0x1ae   :  { %3186 = vpush %v917_v35 }
 0x1af   :  { %3188 = vpush %v928_v33  ;;  %v688_v33 = vstv %s3765_s7 }
 0x1b0   :  { %3190 = vpush %v937_v32 }
 0x1b1   :  { %v944_v37 = vpop.permute.xlu1 %943  ;;  %v998_v38 = vpop.permute.xlu0 %997 }
 0x1b2   :  { %3192 = vpush %v944_v37 }
 0x1b3   :  { %3194 = vpush %v962_v36  ;;  %v728_v36 = vstv %s3772_s13 }
 0x1b5   :  { %v980_v39 = vpop.permute.xlu1 %979  ;;  %v1022_v42 = vpop.permute.xlu0 %1021 }
 0x1b6   :  { %3196 = vpush %v980_v39 }
 0x1b7   :  { %3198 = vpush %v998_v38 }
 0x1b9   :  { %v1010_v45 = vpop.permute.xlu1 %1009  ;;  %v1046_v46 = vpop.permute.xlu0 %1045 }
 0x1ba   :  { %3200 = vpush %v1010_v45 }
 0x1bb   :  { %3202 = vpush %v1022_v42 }
 0x1bd   :  { %v1034_v49 = vpop.permute.xlu1 %1033  ;;  %v1073_v52 = vpop.permute.xlu0 %1072 }
 0x1be   :  { %3204 = vpush %v1034_v49 }
 0x1bf   :  { %3206 = vpush %v1046_v46 }
 0x1c0   :  { %3208 = vpush %v1057_v48 }
 0x1c1   :  { %v1066_v41 = vpop.permute.xlu1 %1065  ;;  %v1109_v51 = vpop.permute.xlu0 %1108 }
 0x1c2   :  { %3210 = vpush %v1066_v41  ;;  %v648_v41 = vrot.slane %v3734_v5, %v3457_v25 }
 0x1c3   :  { %3212 = vpush %v1073_v52 }
 0x1c5   :  { %v1091_v54 = vpop.permute.xlu1 %1090  ;;  %v1139_v57 = vpop.permute.xlu0 %1138 }
 0x1c6   :  { %3214 = vpush %v1091_v54 }
 0x1c7   :  { %3216 = vpush %v1109_v51 }
 0x1c9   :  { %v1127_v58 = vpop.permute.xlu1 %1126  ;;  %v1163_v50 = vpop.permute.xlu0 %1162 }
 0x1ca   :  { %3218 = vpush %v1127_v58 }
 0x1cb   :  { %3220 = vpush %v1139_v57 }
 0x1cd   :  { %v1151_v61 = vpop.permute.xlu1 %1150  ;;  %v3784_v62 = vpop.permute.xlu0 %620 }
 0x1ce   :  { %v623_v56 = vmul.f32 %v3784_v62, %v603_v59  ;;  %3222 = vpush %v1151_v61  ;;  %v746_v61 = vstv %s3774_s1  ;;  %s4415_s1 = smov 112  }
 0x1cf   :  { %3224 = vpush %v1163_v50  ;;  %s3789_s22 = spop %3170 }
 0x1d0   :  { %4404 = sst [smem:[#allocation4_spill]] %s3789_s22  ;;  %s3791_s23 = spop %3172  ;;  %v696_v15 = vmul.f32 %v694_v44, %v623_v56  ;;  %v810_v12 = vstv %s3789_s22 }
 0x1d1   :  { %v1175_v47 = vpop.permute.xlu1 %1174  ;;  %v817_v63 = vstv %s3791_s23  ;;  %v3872_v20 = vpop.permute.xlu0 %640  ;;  %s4413_s22 = smov 120  }
 0x1d2   :  { %3226 = vpush %v1175_v47  ;;  %v819_v43 = vmul.f32 %v817_v63, %v623_v56  ;;  %v643_v21 = vmul.f32 %v3872_v20, %v603_v59 }
 0x1d3   :  { %s3796_s24 = spop %3174 }
 0x1d4   :  { %823 = vrot.lane.b32.xlu0 %v819_v43, %s4392_s8  ;;  %s3799_s26 = spop %3176  ;;  %v835_v3 = vstv %s3796_s24  ;;  %v730_v38 = vmul.f32 %v728_v36, %v643_v21 }
 0x1d5   :  { %v3807_v0 = vpop.permute.xlu1 %630  ;;  %v853_v23 = vstv %s3799_s26 }
 0x1d6   :  { %v633_v6 = vmul.f32 %v3807_v0, %v603_v59  ;;  %v855_v24 = vmul.f32 %v853_v23, %v643_v21 }
 0x1d7   :  { %s3801_s28 = spop %3178 }
 0x1d8   :  { %s3803_s16 = spop %3180  ;;  %v837_v53 = vmul.f32 %v835_v3, %v633_v6  ;;  %v713_v22 = vmul.f32 %v711_v19, %v633_v6  ;;  %v871_v58 = vstv %s3801_s28  ;;  %s4427_s28 = smov 9  }
 0x1d9   :  { %v3815_v1 = vpop.permute.xlu1 %655 }
 0x1db   :  { %s3805_s9 = spop %3182 }
 0x1dc   :  { %s3809_s11 = spop %3184 }
 0x1dd   :  { %v3827_v11 = vpop.permute.xlu1 %673 }
 0x1df   :  { %s3811_s27 = spop %3186 }
 0x1e0   :  { %4405 = sst [smem:[#allocation5_spill]] %s3811_s27  ;;  %s3813_s0 = spop %3188 }
 0x1e1   :  { %4406 = sst [smem:[#allocation6_spill]] %s3813_s0  ;;  %s3817_s17 = spop %3190  ;;  %v3843_v7 = vpop.permute.xlu1 %610 }
 0x1e2   :  { %4407 = sst [smem:[#allocation7_spill]] %s3817_s17  ;;  %v613_v10 = vmul.f32 %v3843_v7, %v603_v59  ;;  %v939_v27 = vstv %s3817_s17  ;;  %s4425_s23 = sld [smem:[#allocation6_spill]] }
 0x1e3   :  { %s3819_s30 = spop %3192 }
 0x1e4   :  { %v946_v60 = vstv %s3819_s30  ;;  %s3825_s29 = spop %3194  ;;  %v3860_v13 = vmul.f32 %v810_v12, %v613_v10  ;;  %v3892_v32 = vmul.f32 %v939_v27, %v613_v10  ;;  %v3901_v37 = vmul.f32 %v688_v33, %v613_v10 }
 0x1e5   :  { %v948_v2 = vmul.f32 %v946_v60, %v623_v56  ;;  %v964_v14 = vstv %s3825_s29  ;;  %s4416_s29 = smov 111  }
 0x1e6   :  { %v966_v17 = vmul.f32 %v964_v14, %v633_v6 }
 0x1e7   :  { %952 = vrot.lane.b32.xlu0 %v948_v2, %s4392_s8  ;;  %s3833_s21 = spop %3196 }
 0x1e8   :  { %s3836_s25 = spop %3198  ;;  %v982_v30 = vstv %s3833_s21 }
 0x1e9   :  { %v984_v35 = vmul.f32 %v982_v30, %v643_v21 }
 0x1eb   :  { %700 = vrot.lane.b32.xlu0 %v696_v15, %s4392_s8  ;;  %s3839_s6 = spop %3200  ;;  %v757_v15 = vstv %s3776_s14 }
 0x1ec   :  { %s3845_s4 = spop %3202 }
 0x1ef   :  { %s3847_s5 = spop %3204  ;;  %841 = vrot.lane.b32.xlu0 %v837_v53, %s4408_s3 }
 0x1f0   :  { %s3852_s8 = spop %3206 }
 0x1f1   :  { %4409 = sst [smem:[#allocation8_spill]] %s3852_s8  ;;  %s3854_s0 = spop %3208 }
 0x1f2   :  { %4410 = sst [smem:[#allocation9_spill]] %s3854_s0  ;;  %s4412_s8 = smov 127  }
 0x1f3   :  { %s3856_s20 = spop %3210  ;;  %s4426_s24 = sld [smem:[#allocation9_spill]] }
 0x1f4   :  { %4411 = sst [smem:[#allocation10_spill]] %s3856_s20  ;;  %s3862_s2 = spop %3212  ;;  %v1068_v45 = vstv %s3856_s20 }
 0x1f5   :  { %v1075_v55 = vstv %s3862_s2  ;;  %v3916_v46 = vmul.f32 %v1068_v45, %v613_v10  ;;  %s4414_s20 = smov 119  }
 0x1f6   :  { %v1077_v16 = vmul.f32 %v1075_v55, %v623_v56 }
 0x1f7   :  { %s3879_s0 = spop %3214 }
 0x1f8   :  { %1081 = vrot.lane.b32.xlu0 %v1077_v16, %s4412_s8  ;;  %v1093_v26 = vstv %s3879_s0  ;;  %s3903_s27 = spop %3216  ;;  %v768_v16 = vstv %s3778_s15  ;;  %s4418_s0 = sld [smem:[#allocation5_spill]] }
 0x1f9   :  { %v1095_v29 = vmul.f32 %v1093_v26, %v633_v6  ;;  %v1111_v39 = vstv %s3903_s27 }
 0x1fa   :  { %v1113_v42 = vmul.f32 %v1111_v39, %v643_v21 }
 0x1fb   :  { %s3219_s17 = spop %3218 }
 0x1fc   :  { %970 = vrot.lane.b32.xlu0 %v966_v17, %s4408_s3  ;;  %v1129_v47 = vstv %s3219_s17  ;;  %s3221_s30 = spop %3220  ;;  %s3366_s17 = smov 118  }
 0x1ff   :  { %s3223_s10 = spop %3222 }
 0x200   :  { %717 = vrot.lane.b32.xlu0 %v713_v22, %s4408_s3  ;;  %v1153_v21 = vstv %s3223_s10  ;;  %v1186_v22 = vrot.slane %v3702_v4, 3  ;;  %s3225_s2 = spop %3224 }
 0x202   :  { %3228 = vpush %v1186_v22 }
 0x204   :  { %859 = vrot.lane.b32.xlu0 %v855_v24, %s4413_s22 }
 0x208   :  { %1099 = vrot.lane.b32.xlu0 %v1095_v29, %s4408_s3 }
 0x20c   :  { %988 = vrot.lane.b32.xlu0 %v984_v35, %s4413_s22 }
 0x210   :  { %734 = vrot.lane.b32.xlu0 %v730_v38, %s4413_s22 }
 0x214   :  { %1117 = vrot.lane.b32.xlu0 %v1113_v42, %s4413_s22  ;;  %v1165_v42 = vstv %s3225_s2  ;;  %s4429_s2 = sld [smem:[#allocation11_spill]] }
 0x271   :  { %v2849_v48 = vpop.f32.mrb[0].mxu0 }
 0x272   :  { %v2850_v49 = vpop.f32.mrb[1].mxu0 }
 0x273   :  { %v2851_v52 = vadd.f32 %v2850_v49, %v2849_v48  ;;  %v790_v49 = vstv %s3782_s19  ;;  %s4424_s19 = sld [smem:[#allocation3_spill]] }
 0x275   :  { %602 = vst.msk [vmem:[#allocation2 + $0x8] sm:$0x3] %vm601_vm13, %v2851_v52  ;;  %vm1610_vm13 = vcmask 261120  }
 0x27c   :  { %v3920_v51 = vld [vmem:[#allocation2 + $0x8] sm:$0x3] }
 0x27d   :  { %v3923_v54 = vmul.f32 %v648_v41, %v3920_v51  ;;  %v624_v57 = vmul.f32 %v3784_v62, %v3920_v51  ;;  %v634_v2 = vmul.f32 %v3807_v0, %v3920_v51  ;;  %v676_v29 = vmul.f32 %v3827_v11, %v3920_v51 }
 0x27f   :  { %v873_v50 = vmul.f32 %v871_v58, %v3923_v54  ;;  %v820_v59 = vmul.f32 %v817_v63, %v624_v57  ;;  %v748_v5 = vmul.f32 %v746_v61, %v3923_v54  ;;  %v949_v56 = vmul.f32 %v946_v60, %v624_v57 }
 0x280   :  { %v1131_v62 = vmul.f32 %v1129_v47, %v3923_v54  ;;  %v3942_v63 = vmul.f32 %v3815_v1, %v3920_v51  ;;  %v697_v43 = vmul.f32 %v694_v44, %v624_v57  ;;  %v838_v6 = vmul.f32 %v835_v3, %v634_v2  ;;  %v665_v44 = vpop.permute.xlu0 %664 }
 0x281   :  { %875 = vrot.lane.b32.xlu0 %v873_v50, %s4414_s20  ;;  %825 = vrot.lane.b32.xlu1 %v820_v59, %s4412_s8  ;;  %v1141_v1 = vstv %s3221_s30  ;;  %v667_v0 = vmul.f32 %v665_v44, %v3920_v51  ;;  %v1078_v10 = vmul.f32 %v1075_v55, %v624_v57  ;;  %v967_v17 = vmul.f32 %v964_v14, %v634_v2  ;;  %s4428_s30 = smov 16  }
 0x282   :  { %v759_v60 = vmul.f32 %v757_v15, %v3942_v63  ;;  %v1143_v53 = vmul.f32 %v1141_v1, %v3942_v63  ;;  %v644_v55 = vmul.f32 %v3872_v20, %v3920_v51  ;;  %v714_v35 = vmul.f32 %v711_v19, %v634_v2 }
 0x283   :  { %v770_v3 = vmul.f32 %v768_v16, %v667_v0  ;;  %v1155_v24 = vmul.f32 %v1153_v21, %v667_v0  ;;  %v779_v14 = vstv %s3780_s18  ;;  %v1167_v19 = vmul.f32 %v1165_v42, %v676_v29 }
 0x284   :  { %v781_v4 = vmul.f32 %v779_v14, %v676_v29  ;;  %v856_v20 = vmul.f32 %v853_v23, %v644_v55  ;;  %v683_v38 = vpop.permute.xlu0 %682  ;;  %v1096_v48 = vmul.f32 %v1093_v26, %v634_v2  ;;  %v985_v52 = vmul.f32 %v982_v30, %v644_v55 }
 0x285   :  { %750 = vrot.lane.b32.xlu0 %v748_v5, %s4414_s20  ;;  %954 = vrot.lane.b32.xlu1 %v949_v56, %s4412_s8  ;;  %v685_v11 = vmul.f32 %v683_v38, %v3920_v51  ;;  %v731_v41 = vmul.f32 %v728_v36, %v644_v55  ;;  %v1114_v26 = vmul.f32 %v1111_v39, %v644_v55  ;;  %v1000_v57 = vstv %s3836_s25  ;;  %s4419_s25 = sld [smem:[#allocation8_spill]] }
 0x286   :  { %v1002_v58 = vmul.f32 %v1000_v57, %v3923_v54  ;;  %v883_v30 = vstv %s3803_s16  ;;  %v1012_v59 = vstv %s3839_s6  ;;  %v895_v39 = vstv %s3805_s9  ;;  %s4420_s9 = sld [smem:[#allocation13_spill]]  ;;  %s3371_s6 = smov 4  }
 0x287   :  { %v792_v23 = vmul.f32 %v790_v49, %v685_v11  ;;  %v885_v50 = vmul.f32 %v883_v30, %v3942_v63  ;;  %v1014_v36 = vmul.f32 %v1012_v59, %v3942_v63  ;;  %v897_v61 = vmul.f32 %v895_v39, %v667_v0  ;;  %s3374_s16 = smov 122  }
 0x288   :  { %v1024_v5 = vstv %s3845_s4  ;;  %v4009_v56 = vpop.permute.xlu0 %823  ;;  %v907_v47 = vstv %s3809_s11  ;;  %v919_v15 = vstv %s4418_s0  ;;  %s3227_s4 = spop %3226  ;;  %s3373_s11 = smov 5  }
 0x289   :  { %1133 = vrot.lane.b32.xlu0 %v1131_v62, %s4414_s20  ;;  %702 = vrot.lane.b32.xlu1 %v697_v43, %s4412_s8  ;;  %v1026_v54 = vmul.f32 %v1024_v5, %v667_v0  ;;  %v909_v62 = vmul.f32 %v907_v47, %v676_v29  ;;  %v1036_v43 = vstv %s3847_s5  ;;  %v1177_v0 = vstv %s3227_s4  ;;  %s3229_s26 = spop %3228  ;;  %s4431_s4 = smov 125  }
 0x28a   :  { %v1038_v2 = vmul.f32 %v1036_v43, %v676_v29  ;;  %v614_v5 = vmul.f32 %v3843_v7, %v3920_v51  ;;  %s3370_s5 = smov 3  }
 0x28c   :  { %v4015_v63 = vpop.permute.xlu0 %952  ;;  %v2784_v16 = vld [vmem:[%s4420_s9] sm:$0xff]   ;;  %v2815_v22 = vld [vmem:[%s4420_s9 + $0x10] sm:$0xff]   ;;  %v2816_v55 = vld [vmem:[%s4420_s9 + $0x18] sm:$0xff]  }
 0x28d   :  { %761 = vrot.lane.b32.xlu0 %v759_v60, %s3366_s17  ;;  %843 = vrot.lane.b32.xlu1 %v838_v6, %s4408_s3  ;;  %v921_v60 = vmul.f32 %v919_v15, %v685_v11  ;;  %v1048_v6 = vstv %s4419_s25  ;;  %s4430_s25 = smov 1  }
 0x28e   :  { %v1050_v44 = vmul.f32 %v1048_v6, %v685_v11 }
 0x290   :  { %v701_v1 = vpop.permute.xlu0 %700 }
 0x291   :  { %1145 = vrot.lane.b32.xlu0 %v1143_v53, %s3366_s17  ;;  %1083 = vrot.lane.b32.xlu1 %v1078_v10, %s4412_s8  ;;  %v3367_v10 = vmov 0.0|0.0  }
 0x292   :  { %3063 = vmatprep.subr.bf16.mxu1 %v3367_v10 }
 0x293   :  { %3065 = vmatpush3.bf16.msra.mxu1 %v2784_v16 }
 0x294   :  { %v4022_v53 = vpop.permute.xlu0 %841  ;;  %3066 = vmatprep.subr.bf16.mxu1 %v3367_v10 }
 0x295   :  { %772 = vrot.lane.b32.xlu0 %v770_v3, %s4415_s1  ;;  %972 = vrot.lane.b32.xlu1 %v967_v17, %s4408_s3  ;;  %v1179_v3 = vmul.f32 %v1177_v0, %v685_v11  ;;  %v2814_v17 = vld [vmem:[%s4420_s9 + $0x8] sm:$0xff]   ;;  %s3372_s9 = smov 123  }
 0x297   :  { %3068 = vmatpush3.bf16.msra.mxu1 %v2814_v17  ;;  %v813_v17 = vmul.f32 %v810_v12, %v614_v5 }
 0x298   :  { %v1082_v21 = vpop.permute.xlu0 %1081  ;;  %3069 = vmatprep.subr.bf16.mxu1 %v3367_v10 }
 0x299   :  { %1157 = vrot.lane.b32.xlu0 %v1155_v24, %s4415_s1  ;;  %719 = vrot.lane.b32.xlu1 %v714_v35, %s4408_s3 }
 0x29b   :  { %3071 = vmatpush3.bf16.msra.mxu1 %v2815_v22 }
 0x29c   :  { %3072 = vmatprep.subr.bf16.mxu1 %v3367_v10  ;;  %v4041_v24 = vpop.permute.xlu0 %970 }
 0x29d   :  { %783 = vrot.lane.b32.xlu0 %v781_v4, %s4416_s29  ;;  %861 = vrot.lane.b32.xlu1 %v856_v20, %s4413_s22 }
 0x29f   :  { %3074 = vmatpush3.bf16.msra.mxu1 %v2816_v55  ;;  %v1071_v55 = vmul.f32 %v1068_v45, %v614_v5 }
 0x2a0   :  { %3075 = vmatprep.subr.bf16.mxu1 %v3367_v10  ;;  %v718_v29 = vpop.permute.xlu0 %717 }
 0x2a1   :  { %1169 = vrot.lane.b32.xlu0 %v1167_v19, %s4416_s29  ;;  %1101 = vrot.lane.b32.xlu1 %v1096_v48, %s4408_s3 }
 0x2a4   :  { %v860_v35 = vpop.permute.xlu0 %859 }
 0x2a5   :  { %794 = vrot.lane.b32.xlu0 %v792_v23, %s4417_s12  ;;  %990 = vrot.lane.b32.xlu1 %v985_v52, %s4413_s22 }
 0x2a8   :  { %v1100_v14 = vpop.permute.xlu0 %1099 }
 0x2a9   :  { %736 = vrot.lane.b32.xlu1 %v731_v41, %s4413_s22 }
 0x2ac   :  { %v4044_v20 = vpop.permute.xlu0 %988 }
 0x2ad   :  { %1119 = vrot.lane.b32.xlu1 %v1114_v26, %s4413_s22 }
 0x2b0   :  { %v735_v11 = vpop.permute.xlu0 %734 }
 0x2b1   :  { %1004 = vrot.lane.b32.xlu1 %v1002_v58, %s4414_s20 }
 0x2b4   :  { %v1118_v48 = vpop.permute.xlu0 %1117 }
 0x2b5   :  { %887 = vrot.lane.b32.xlu1 %v885_v50, %s3366_s17 }
 0x2b9   :  { %1016 = vrot.lane.b32.xlu1 %v1014_v36, %s3366_s17 }
 0x2bd   :  { %899 = vrot.lane.b32.xlu1 %v897_v61, %s4415_s1 }
 0x2c1   :  { %1028 = vrot.lane.b32.xlu1 %v1026_v54, %s4415_s1  ;;  %s3376_s1 = smov 2  }
 0x2c5   :  { %911 = vrot.lane.b32.xlu1 %v909_v62, %s4416_s29  ;;  %v691_v62 = vmul.f32 %v688_v33, %v614_v5 }
 0x2c9   :  { %1040 = vrot.lane.b32.xlu1 %v1038_v2, %s4416_s29  ;;  %s3369_s29 = smov 124  }
 0x2cd   :  { %923 = vrot.lane.b32.xlu1 %v921_v60, %s4417_s12 }
 0x2d1   :  { %1052 = vrot.lane.b32.xlu1 %v1050_v44, %s4417_s12 }
 0x2d5   :  { %1181 = vrot.lane.b32.xlu1 %v1179_v3, %s4417_s12  ;;  %s4433_s12 = sld [smem:[#allocation14_spill]] }
 0x2f3   :  { %v826_v4 = vpop.permute.xlu1 %825  ;;  %v4050_v52 = vpop.permute.xlu0 %875 }
 0x2f4   :  { %v827_v33 = vsel %vm118_vm2, %v4009_v56, %v826_v4 }
 0x2f7   :  { %v4046_v38 = vpop.permute.xlu1 %954  ;;  %v751_v26 = vpop.permute.xlu0 %750 }
 0x2fb   :  { %v703_v42 = vpop.permute.xlu1 %702  ;;  %v4052_v30 = vpop.permute.xlu0 %1133 }
 0x2fc   :  { %v704_v47 = vsel %vm118_vm2, %v701_v1, %v703_v42  ;;  %v708_v60 = vadd.f32 %v703_v42, %v691_v62 }
 0x2fd   :  { %v707_v15 = vadd.f32 %v704_v47, %v3901_v37 }
 0x2ff   :  { %v844_v19 = vpop.permute.xlu1 %843  ;;  %v762_v59 = vpop.permute.xlu0 %761 }
 0x300   :  { %v845_v37 = vsel %vm165_vm8, %v4022_v53, %v844_v19  ;;  %v956_v53 = vsel %vm118_vm2, %v4015_v63, %v4046_v38 }
 0x303   :  { %v1084_v49 = vpop.permute.xlu1 %1083  ;;  %v4056_v61 = vpop.permute.xlu0 %1145 }
 0x304   :  { %v1085_v22 = vsel %vm118_vm2, %v1082_v21, %v1084_v49  ;;  %v1089_v62 = vadd.f32 %v1084_v49, %v1071_v55 }
 0x305   :  { %v1088_v56 = vadd.f32 %v1085_v22, %v3916_v46 }
 0x307   :  { %v4048_v23 = vpop.permute.xlu1 %972  ;;  %v773_v43 = vpop.permute.xlu0 %772 }
 0x30b   :  { %v720_v41 = vpop.permute.xlu1 %719  ;;  %v4068_v1 = vpop.permute.xlu0 %1157 }
 0x30c   :  { %v721_v2 = vsel %vm165_vm8, %v718_v29, %v720_v41  ;;  %v725_v7 = vadd.f32 %v720_v41, %v708_v60  ;;  %v830_v41 = vadd.f32 %v827_v33, %v3860_v13 }
 0x30d   :  { %v724_v0 = vadd.f32 %v721_v2, %v707_v15 }
 0x30e   :  { %v848_v21 = vadd.f32 %v845_v37, %v830_v41 }
 0x30f   :  { %v862_v57 = vpop.permute.xlu1 %861  ;;  %v784_v2 = vpop.permute.xlu0 %783 }
 0x310   :  { %v863_v12 = vsel %vm738_vm14, %v860_v35, %v862_v57  ;;  %v974_v35 = vsel %vm165_vm8, %v4041_v24, %v4048_v23 }
 0x311   :  { %v866_v46 = vadd.f32 %v863_v12, %v848_v21 }
 0x313   :  { %v1102_v58 = vpop.permute.xlu1 %1101 }
 0x314   :  { %v1103_v47 = vsel %vm165_vm8, %v1100_v14, %v1102_v58  ;;  %v1107_v13 = vadd.f32 %v1102_v58, %v1089_v62  ;;  %v942_v14 = vmul.f32 %v939_v27, %v614_v5  ;;  %v1170_v5 = vpop.permute.xlu0 %1169 }
 0x315   :  { %v1106_v15 = vadd.f32 %v1103_v47, %v1088_v56 }
 0x317   :  { %v4054_v50 = vpop.permute.xlu1 %990 }
 0x318   :  { %v795_v41 = vpop.permute.xlu0 %794 }
 0x31b   :  { %v737_v36 = vpop.permute.xlu1 %736 }
 0x31c   :  { %v739_v44 = vsel %vm738_vm14, %v735_v11, %v737_v36  ;;  %v743_v16 = vadd.f32 %v737_v36, %v725_v7  ;;  %v831_v36 = vadd.f32 %v826_v4, %v813_v17  ;;  %v960_v7 = vadd.f32 %v4046_v38, %v942_v14 }
 0x31d   :  { %v742_v51 = vadd.f32 %v739_v44, %v724_v0 }
 0x31e   :  { %v754_v42 = vadd.f32 %v751_v26, %v743_v16  ;;  %v849_v45 = vadd.f32 %v844_v19, %v831_v36  ;;  %v959_v19 = vadd.f32 %v956_v53, %v3892_v32  ;;  %v878_v16 = vadd.f32 %v4050_v52, %v866_v46 }
 0x31f   :  { %v1120_v39 = vpop.permute.xlu1 %1119  ;;  %v753_v29 = vadd.f32 %v751_v26, %v742_v51 }
 0x320   :  { %v1121_v26 = vsel %vm738_vm14, %v1118_v48, %v1120_v39  ;;  %v765_v4 = vadd.f32 %v762_v59, %v754_v42  ;;  %v867_v49 = vadd.f32 %v862_v57, %v849_v45  ;;  %v1125_v63 = vadd.f32 %v1120_v39, %v1107_v13 }
 0x321   :  { %v764_v60 = vadd.f32 %v762_v59, %v753_v29  ;;  %v1124_v0 = vadd.f32 %v1121_v26, %v1106_v15  ;;  %v992_v48 = vsel %vm738_vm14, %v4044_v20, %v4054_v50  ;;  %v977_v27 = vadd.f32 %v974_v35, %v959_v19 }
 0x322   :  { %v776_v59 = vadd.f32 %v773_v43, %v765_v4  ;;  %v978_v57 = vadd.f32 %v4048_v23, %v960_v7  ;;  %v879_v24 = vadd.f32 %v4050_v52, %v867_v49  ;;  %v1137_v32 = vadd.f32 %v4052_v30, %v1125_v63 }
 0x323   :  { %v4060_v54 = vpop.permute.xlu1 %1004  ;;  %v775_v58 = vadd.f32 %v773_v43, %v764_v60  ;;  %v1136_v39 = vadd.f32 %v4052_v30, %v1124_v0  ;;  %v995_v38 = vadd.f32 %v992_v48, %v977_v27  ;;  %v1059_v4 = vstv %s4426_s24 }
 0x324   :  { %v996_v33 = vadd.f32 %v4054_v50, %v978_v57  ;;  %v787_v43 = vadd.f32 %v784_v2, %v776_v59  ;;  %v1149_v30 = vadd.f32 %v4056_v61, %v1137_v32  ;;  %v1188_v57 = vstv %s3229_s26 }
 0x325   :  { %v786_v22 = vadd.f32 %v784_v2, %v775_v58  ;;  %v1007_v55 = vadd.f32 %v4060_v54, %v995_v38  ;;  %v1148_v52 = vadd.f32 %v4056_v61, %v1136_v39  ;;  %v801_v2 = vstv %s4424_s19 }
 0x326   :  { %v1008_v23 = vadd.f32 %v4060_v54, %v996_v33  ;;  %v798_v62 = vadd.f32 %v795_v41, %v787_v43  ;;  %v1161_v15 = vadd.f32 %v4068_v1, %v1149_v30  ;;  %vm1686_vm14 = vcmask 64512  }
 0x327   :  { %v888_v6 = vpop.permute.xlu1 %887  ;;  %v797_v56 = vadd.f32 %v795_v41, %v786_v22  ;;  %v1160_v26 = vadd.f32 %v4068_v1, %v1148_v52 }
 0x328   :  { %v890_v17 = vadd.f32 %v888_v6, %v878_v16  ;;  %v891_v20 = vadd.f32 %v888_v6, %v879_v24  ;;  %v804_v49 = vadd.f32 %v801_v2, %v798_v62  ;;  %v1173_v7 = vadd.f32 %v1170_v5, %v1161_v15 }
 0x329   :  { %v803_v46 = vadd.f32 %v801_v2, %v797_v56  ;;  %v1172_v19 = vadd.f32 %v1170_v5, %v1160_v26  ;;  %v1351_v2 = vld [vmem:[%s4429_s2 + $0x20] sm:$0xfc] }
 0x32a   :  { %v806_v24 = vmax.f32 %v804_v49, 0.0  ;;  %v1388_v15 = vrot.slane %v1351_v2, %v3457_v25 }
 0x32b   :  { %v1017_v3 = vpop.permute.xlu1 %1016  ;;  %v805_v16 = vmax.f32 %v803_v46, 0.0  ;;  %v1358_v46 = vrot.slane %v1351_v2, %v3423_v8 }
 0x32c   :  { %v1019_v36 = vadd.f32 %v1017_v3, %v1007_v55  ;;  %v1020_v50 = vadd.f32 %v1017_v3, %v1008_v23 }
 0x32f   :  { %v900_v11 = vpop.permute.xlu1 %899 }
 0x330   :  { %v902_v29 = vadd.f32 %v900_v11, %v890_v17  ;;  %v903_v42 = vadd.f32 %v900_v11, %v891_v20  ;;  %v930_v11 = vstv %s4425_s23 }
 0x333   :  { %v1029_v44 = vpop.permute.xlu1 %1028 }
 0x334   :  { %v1031_v53 = vadd.f32 %v1029_v44, %v1019_v36  ;;  %v1032_v21 = vadd.f32 %v1029_v44, %v1020_v50 }
 0x337   :  { %v912_v51 = vpop.permute.xlu1 %911 }
 0x338   :  { %v914_v47 = vadd.f32 %v912_v51, %v902_v29  ;;  %v915_v6 = vadd.f32 %v912_v51, %v903_v42  ;;  %v4112_v51 = vld [vmem:[#allocation2] sm:$0xff] }
 0x339   :  { %2929 = vmatprep.mubr.msk.f32.mxu1 %vm3368_vm0, %v4112_v51 }
 0x33b   :  { %v1041_v37 = vpop.permute.xlu1 %1040 }
 0x33c   :  { %v1043_v61 = vadd.f32 %v1041_v37, %v1031_v53  ;;  %v1044_v13 = vadd.f32 %v1041_v37, %v1032_v21 }
 0x33f   :  { %v924_v12 = vpop.permute.xlu1 %923 }
 0x340   :  { %v926_v54 = vadd.f32 %v924_v12, %v914_v47  ;;  %v927_v45 = vadd.f32 %v924_v12, %v915_v6 }
 0x342   :  { %v932_v60 = vadd.f32 %v930_v11, %v926_v54  ;;  %v933_v3 = vadd.f32 %v930_v11, %v927_v45 }
 0x343   :  { %v1053_v14 = vpop.permute.xlu1 %1052 }
 0x344   :  { %v934_v35 = vmax.f32 %v932_v60, 0.0  ;;  %v935_v0 = vmax.f32 %v933_v3, 0.0  ;;  %v1055_v63 = vadd.f32 %v1053_v14, %v1043_v61  ;;  %v1056_v44 = vadd.f32 %v1053_v14, %v1044_v13  ;;  %v1352_v3 = vld [vmem:[%s4429_s2 + $0x30] sm:$0x7] }
 0x345   :  { %v1368_v61 = vrot.slane %v1351_v2, %v3446_v18  ;;  %v1403_v13 = vrot.slane %v1351_v2, %v3475_v31  ;;  %v1378_v60 = vrot.slane %v1351_v2, %v3504_v40  ;;  %v1421_v14 = vrot.slane %v1352_v3, %v3426_v9 }
 0x346   :  { %v1196_v48 = vrot.slane %v934_v35, 6  ;;  %v1197_v58 = vrot.slane %v935_v0, 6  ;;  %v1061_v59 = vadd.f32 %v1059_v4, %v1055_v63  ;;  %v1062_v1 = vadd.f32 %v1059_v4, %v1056_v44 }
 0x347   :  { %v1182_v27 = vpop.permute.xlu1 %1181  ;;  %v1412_v4 = vrot.slane %v1352_v3, %v3484_v34  ;;  %v1430_v49 = vrot.slane %v1352_v3, %v3423_v8 }
 0x348   :  { %v1063_v39 = vmax.f32 %v1061_v59, 0.0  ;;  %v1064_v32 = vmax.f32 %v1062_v1, 0.0  ;;  %v1184_v38 = vadd.f32 %v1182_v27, %v1172_v19  ;;  %v1185_v33 = vadd.f32 %v1182_v27, %v1173_v7  ;;  %v1353_v19 = vld [vmem:[#allocation2] sm:$0xf] }
 0x349   :  { %v1213_v5 = vsel %vm1212_vm15, %v805_v16, %v1196_v48  ;;  %v1214_v17 = vsel %vm1212_vm15, %v806_v24, %v1197_v58  ;;  %vm2689_vm15 = vcmask 10240  }
 0x34a   :  { %v1202_v20 = vrot.slane %v1063_v39, 4  ;;  %v1203_v22 = vrot.slane %v1064_v32, 4  ;;  %v1190_v43 = vadd.f32 %v1188_v57, %v1184_v38  ;;  %v1191_v37 = vadd.f32 %v1188_v57, %v1185_v33 }
 0x34c   :  { %v1192_v55 = vmax.f32 %v1190_v43, 0.0  ;;  %v1193_v23 = vmax.f32 %v1191_v37, 0.0  ;;  %v1216_v29 = vsel %vm1215_vm1, %v1213_v5, %v1202_v20  ;;  %v1217_v42 = vsel %vm1215_vm1, %v1214_v17, %v1203_v22 }
 0x34d   :  { %v1398_v17 = vrot.slane %v1351_v2, %v3466_v28 }
 0x34e   :  { %v1208_v52 = vrot.slane %v1192_v55, 2  ;;  %v1209_v30 = vrot.slane %v1193_v23, 2 }
 0x350   :  { %v1219_v41 = vsel %vm1218_vm3, %v1216_v29, %v1208_v52  ;;  %v1220_v36 = vsel %vm1218_vm3, %v1217_v42, %v1209_v30 }
 0x351   :  { %1239 = vrot.lane.b32.xlu0 %v1219_v41, %s4427_s28  ;;  %1241 = vrot.lane.b32.xlu1 %v1220_v36, %s4427_s28 }
 0x3c3   :  { %v1240_v50 = vpop.permute.xlu0 %1239  ;;  %v1242_v47 = vpop.permute.xlu1 %1241 }
 0x3c4   :  { %v1244_v6 = vsel %vm1243_vm4, %v1240_v50, %v1242_v47 }
 0x3c5   :  { %2930 = vmatmul.mubr.msk.f32.vlgmr.msra.gmra.mrb[0].mxu1 %vm1245_vm6, %v1244_v6 }
 0x3c6   :  { %2942 = vmatprep.mubr.msk.f32.mxu1 %vm3368_vm0, %v4112_v51 }
 0x498   :  { %v1314_v56 = vpop.f32.mrb[0].mxu1 }
 0x499   :  { %v1327_v62 = vrot.slane %v1314_v56, 2  ;;  %v2931_v12 = vpop.f32.mrb[1].mxu1  ;;  %v1330_v53 = vrot.slane %v1314_v56, 3  ;;  %v1321_v21 = vrot.slane %v1314_v56, 1  ;;  %1319 = vst.msk [vmem:[#allocation2 + $0x8] sm:$0x1] %vm1318_vm7, %v1314_v56 }
 0x49a   :  { %v1343_v54 = vrot.slane %v1314_v56, 6  ;;  %v1335_v45 = vrot.slane %v1314_v56, 4  ;;  %v1346_v11 = vrot.slane %v1314_v56, 7  ;;  %v1338_v26 = vrot.slane %v1314_v56, 5 }
 0x49b   :  { %1331 = vrot.lane.b32.xlu1 %v1330_v53, %s4428_s30  ;;  %1322 = vrot.lane.b32.xlu0 %v1321_v21, %s4428_s30  ;;  %1329 = vst.msk [vmem:[#allocation2 + $0x9] sm:$0x1] %vm1318_vm7, %v1327_v62 }
 0x49c   :  { %1345 = vst.msk [vmem:[#allocation2 + $0xb] sm:$0x1] %vm1318_vm7, %v1343_v54  ;;  %1337 = vst.msk [vmem:[#allocation2 + $0xa] sm:$0x1] %vm1318_vm7, %v1335_v45 }
 0x49f   :  { %1347 = vrot.lane.b32.xlu1 %v1346_v11, %s4428_s30  ;;  %1339 = vrot.lane.b32.xlu0 %v1338_v26, %s4428_s30 }
 0x4a3   :  { %1390 = vrot.lane.b32.xlu1 %v1388_v15, %s4412_s8  ;;  %1370 = vrot.lane.b32.xlu0 %v1368_v61, %s3369_s29 }
 0x4a7   :  { %1405 = vrot.lane.b32.xlu1 %v1403_v13, %s4430_s25  ;;  %1380 = vrot.lane.b32.xlu0 %v1378_v60, %s4431_s4 }
 0x4ab   :  { %1414 = vrot.lane.b32.xlu1 %v1412_v4, %s3370_s5  ;;  %1423 = vrot.lane.b32.xlu0 %v1421_v14, %s3371_s6 }
 0x4af   :  { %1360 = vrot.lane.b32.xlu1 %v1358_v46, %s3372_s9  ;;  %1432 = vrot.lane.b32.xlu0 %v1430_v49, %s3373_s11 }
 0x50d   :  { %v1332_v35 = vpop.permute.xlu1 %1331  ;;  %v1323_v0 = vpop.permute.xlu0 %1322 }
 0x50e   :  { %1326 = vst.msk [vmem:[#allocation2 + $0x8] sm:$0x1] %vm1325_vm9, %v1323_v0  ;;  %1334 = vst.msk [vmem:[#allocation2 + $0x9] sm:$0x1] %vm1325_vm9, %v1332_v35 }
 0x511   :  { %v1348_v63 = vpop.permute.xlu1 %1347  ;;  %v1340_v44 = vpop.permute.xlu0 %1339 }
 0x512   :  { %1350 = vst.msk [vmem:[#allocation2 + $0xb] sm:$0x1] %vm1325_vm9, %v1348_v63  ;;  %1342 = vst.msk [vmem:[#allocation2 + $0xa] sm:$0x1] %vm1325_vm9, %v1340_v44 }
 0x515   :  { %v1371_v7 = vpop.permute.xlu0 %1370  ;;  %v1391_v48 = vpop.permute.xlu1 %1390 }
 0x516   :  { %v1373_v58 = vmul.f32 %v1371_v7, %v1353_v19  ;;  %v1393_v1 = vmul.f32 %v1391_v48, %v1353_v19 }
 0x518   :  { %v1438_v24 = vrot.slane %v1373_v58, 4  ;;  %v1458_v20 = vrot.slane %v1393_v1, 4  ;;  %v3375_v58 = vmov 0  }
 0x519   :  { %v1354_v59 = vld [vmem:[#allocation2 + $0x8] sm:$0xf]  ;;  %v1381_v27 = vpop.permute.xlu0 %1380  ;;  %v1406_v33 = vpop.permute.xlu1 %1405  ;;  %3297 = vset.pattern.permute.xlu0 %v3375_v58  ;;  %3343 = vset.pattern.permute.xlu1 %v3375_v58 }
 0x51a   :  { %v1394_v57 = vmul.f32 %v1391_v48, %v1354_v59  ;;  %v1374_v16 = vmul.f32 %v1371_v7, %v1354_v59  ;;  %v1383_v39 = vmul.f32 %v1381_v27, %v1353_v19  ;;  %v1384_v32 = vmul.f32 %v1381_v27, %v1354_v59 }
 0x51b   :  { %v1399_v55 = vmul.f32 %v1398_v17, %v1354_v59  ;;  %v1408_v29 = vmul.f32 %v1406_v33, %v1354_v59 }
 0x51c   :  { %v1439_v38 = vrot.slane %v1374_v16, 4  ;;  %v3267_v5 = vpack.i.bf16 %v1384_v32, %v1383_v39  ;;  %v1459_v22 = vrot.slane %v1394_v57, 4 }
 0x51d   :  { %v1424_v37 = vpop.permute.xlu0 %1423  ;;  %v1415_v42 = vpop.permute.xlu1 %1414  ;;  %v1473_v30 = vrot.slane %v1408_v29, 4 }
 0x51e   :  { %v3272_v43 = vpack.i.bf16 %v1439_v38, %v1438_v24  ;;  %3268 = vrot.lane.b32.xlu1 %v3267_v5, %s4408_s3  ;;  %v3277_v23 = vpack.i.bf16 %v1459_v22, %v1458_v20  ;;  %v1417_v52 = vmul.f32 %v1415_v42, %v1354_v59  ;;  %v1426_v41 = vmul.f32 %v1424_v37, %v1354_v59 }
 0x520   :  { %3273 = vrot.lane.b32.xlu0 %v3272_v43, %s4412_s8  ;;  %v1482_v47 = vrot.slane %v1426_v41, 4 }
 0x521   :  { %v1433_v36 = vpop.permute.xlu0 %1432  ;;  %v1361_v6 = vpop.permute.xlu1 %1360 }
 0x522   :  { %1469 = vrot.lane.b32.xlu1 %v1399_v55, %s3372_s9  ;;  %v1435_v50 = vmul.f32 %v1433_v36, %v1354_v59  ;;  %v1363_v62 = vmul.f32 %v1361_v6, %v1353_v19  ;;  %v1364_v53 = vmul.f32 %v1361_v6, %v1354_v59 }
 0x524   :  { %3278 = vrot.lane.b32.xlu0 %v3277_v23, %s3369_s29 }
 0x526   :  { %1478 = vrot.lane.b32.xlu1 %v1417_v52, %s4413_s22 }
 0x528   :  { %1474 = vrot.lane.b32.xlu0 %v1473_v30, %s3374_s16 }
 0x52a   :  { %1487 = vrot.lane.b32.xlu1 %v1435_v50, %s3366_s17  ;;  %s4432_s17 = sld [smem:[#allocation12_spill]]  ;;  %v1684_v50 = vld [vmem:[%s4429_s2 + $0x30] sm:$0xf8] }
 0x52b   :  { %v1723_v6 = vrot.slane %v1684_v50, %v3466_v28 }
 0x52c   :  { %1483 = vrot.lane.b32.xlu0 %v1482_v47, %s4414_s20  ;;  %v1703_v47 = vrot.slane %v1684_v50, %v3504_v40 }
 0x530   :  { %v1496_v27 = vld [vmem:[%s4432_s17 + $0x1f] sm:$0xff]  ;;  %v1495_v29 = vld [vmem:[%s4432_s17 + $0x17] sm:$0xff]  ;;  %v1608_v30 = vld [vmem:[%s4432_s17 + $0x10d] sm:$0xff] }
 0x531   :  { %v1606_v55 = vld [vmem:[%s4432_s17 + $0xfd] sm:$0xff]  ;;  %v1607_v23 = vld [vmem:[%s4432_s17 + $0x105] sm:$0xff]  ;;  %v1609_v41 = vld [vmem:[%s4432_s17 + $0x115] sm:$0xff] }
 0x532   :  { %v3082_v42 = vpack.c.bf16 %v1607_v23, %v1606_v55  ;;  %v3085_v36 = vpack.c.bf16 %v1609_v41, %v1608_v30 }
 0x590   :  { %v3269_v56 = vpop.permute.xlu1 %3268 }
 0x591   :  { %v3271_v45 = vunpack.i.h.bf16 %v3269_v56  ;;  %v3270_v2 = vunpack.i.l.bf16 %v3269_v56  ;;  %v1685_v56 = vld [vmem:[%s4429_s2 + $0x40] sm:$0xf] }
 0x592   :  { %v3274_v12 = vpop.permute.xlu0 %3273  ;;  %v1765_v28 = vrot.slane %v1685_v56, %v3446_v18  ;;  %v1756_v40 = vrot.slane %v1685_v56, %v3423_v8 }
 0x593   :  { %v3276_v21 = vunpack.i.h.bf16 %v3274_v12  ;;  %v3275_v54 = vunpack.i.l.bf16 %v3274_v12  ;;  %v1453_v14 = vsel %vm165_vm8, %v3270_v2, %v3271_v45  ;;  %v1747_v12 = vrot.slane %v1685_v56, %v3426_v9 }
 0x594   :  { %v1470_v15 = vpop.permute.xlu1 %1469 }
 0x595   :  { %v1444_v11 = vsel %vm118_vm2, %v3275_v54, %v3276_v21  ;;  %v1490_v26 = vsel %vm1215_vm1, %v1364_v53, %v3276_v21  ;;  %v1738_v53 = vrot.slane %v1685_v56, %v3484_v34 }
 0x596   :  { %v1489_v61 = vsel %vm1215_vm1, %v1363_v62, %v1444_v11  ;;  %v3279_v13 = vpop.permute.xlu0 %3278  ;;  %v1713_v62 = vrot.slane %v1684_v50, %v3457_v25  ;;  %v1693_v25 = vrot.slane %v1684_v50, %v3446_v18 }
 0x597   :  { %v3282_v60 = vpack.i.bf16 %v1490_v26, %v1489_v61  ;;  %v3281_v3 = vunpack.i.h.bf16 %v3279_v13  ;;  %v3280_v4 = vunpack.i.l.bf16 %v3279_v13 }
 0x598   :  { %v1479_v0 = vpop.permute.xlu1 %1478 }
 0x599   :  { %v1492_v46 = vsel %vm1215_vm1, %v3271_v45, %v3281_v3  ;;  %v1465_v49 = vsel %vm1464_vm10, %v3280_v4, %v3281_v3  ;;  %3283 = vrot.lane.b32.xlu0 %v3282_v60, %s3373_s11 }
 0x59a   :  { %v1491_v35 = vsel %vm1215_vm1, %v1453_v14, %v1465_v49  ;;  %v1475_v63 = vpop.permute.xlu0 %1474 }
 0x59b   :  { %v3287_v44 = vpack.i.bf16 %v1492_v46, %v1491_v35  ;;  %v1493_v7 = vsel %vm1215_vm1, %v1470_v15, %v1475_v63  ;;  %v1733_v35 = vrot.slane %v1684_v50, %v3475_v31 }
 0x59c   :  { %v1488_v59 = vpop.permute.xlu1 %1487 }
 0x59d   :  { %3288 = vrot.lane.b32.xlu1 %v3287_v44, %s3373_s11 }
 0x59e   :  { %v1484_v19 = vpop.permute.xlu0 %1483 }
 0x59f   :  { %v1494_v48 = vsel %vm1215_vm1, %v1479_v0, %v1484_v19 }
 0x5a0   :  { %v3292_v1 = vpack.i.bf16 %v1494_v48, %v1493_v7 }
 0x5a1   :  { %1520 = vrot.lane.b32.xlu1 %v1488_v59, %s3373_s11 }
 0x5a2   :  { %3293 = vrot.lane.b32.xlu0 %v3292_v1, %s3373_s11 }
 0x5a5   :  { %1705 = vrot.lane.b32.xlu1 %v1703_v47, %s4408_s3 }
 0x5a6   :  { %1499 = vperm.xlu0 %3297, %v1496_v27  }
 0x5a9   :  { %1715 = vrot.lane.b32.xlu1 %v1713_v62, %s4412_s8  ;;  %v1810_v62 = vld [vmem:[%s4432_s17 + $0x2f] sm:$0xff] }
 0x5aa   :  { %1725 = vrot.lane.b32.xlu0 %v1723_v6, %s4412_s8 }
 0x5ad   :  { %1740 = vrot.lane.b32.xlu1 %v1738_v53, %s4430_s25  ;;  %v2032_v53 = vld [vmem:[%s4432_s17 + $0x4f] sm:$0xff] }
 0x5ae   :  { %1749 = vrot.lane.b32.xlu0 %v1747_v12, %s4430_s25  ;;  %v1807_v12 = vld [vmem:[%s4433_s12] sm:$0xff]  ;;  %s4434_s25 = sld [smem:[#allocation15_spill]] }
 0x5b1   :  { %1758 = vrot.lane.b32.xlu1 %v1756_v40, %s3376_s1  ;;  %v2224_v40 = vld [vmem:[%s4432_s17 + $0x8f] sm:$0xff] }
 0x5b2   :  { %1767 = vrot.lane.b32.xlu0 %v1765_v28, %s3370_s5  ;;  %v2129_v28 = vld [vmem:[%s4432_s17 + $0x6f] sm:$0xff] }
 0x5b5   :  { %1695 = vrot.lane.b32.xlu1 %v1693_v25, %s4431_s4  ;;  %v2321_v25 = vld [vmem:[%s4432_s17 + $0xaf] sm:$0xff] }
 0x60b   :  { %v3284_v57 = vpop.permute.xlu0 %3283 }
 0x60c   :  { %v3286_v16 = vunpack.i.h.bf16 %v3284_v57  ;;  %v3285_v24 = vunpack.i.l.bf16 %v3284_v57 }
 0x60e   :  { %v1523_v33 = vsel %vm1522_vm11, %v3285_v24, %v3286_v16 }
 0x60f   :  { %v3289_v39 = vpop.permute.xlu1 %3288 }
 0x610   :  { %v3291_v32 = vunpack.i.h.bf16 %v3289_v39  ;;  %v3290_v38 = vunpack.i.l.bf16 %v3289_v39 }
 0x612   :  { %v1524_v5 = vsel %vm1522_vm11, %v3290_v38, %v3291_v32 }
 0x613   :  { %v3076_v17 = vpack.c.bf16 %v1524_v5, %v1523_v33  ;;  %v1521_v52 = vpop.permute.xlu1 %1520 }
 0x614   :  { %v3294_v20 = vpop.permute.xlu0 %3293 }
 0x615   :  { %v3296_v22 = vunpack.i.h.bf16 %v3294_v20  ;;  %v3295_v43 = vunpack.i.l.bf16 %v3294_v20  ;;  %3077 = vmatpush3.bf16.msra.mxu1 %v3076_v17 }
 0x616   :  { %3078 = vmatprep.subr.bf16.mxu1 %v3367_v10 }
 0x617   :  { %v3079_v37 = vpack.c.bf16 %v3296_v22, %v3295_v43  ;;  %v1706_v2 = vpop.permute.xlu1 %1705 }
 0x618   :  { %v1708_v15 = vmul.f32 %v4112_v51, %v1706_v2 }
 0x619   :  { %3080 = vmatpush3.bf16.msra.mxu1 %v3079_v37 }
 0x61a   :  { %2940 = vmatprep.subr.mxu1 %v4112_v51 }
 0x61b   :  { %v1716_v26 = vpop.permute.xlu1 %1715 }
 0x61c   :  { %v1718_v18 = vmul.f32 %v4112_v51, %v1716_v26 }
 0x61d   :  { %2941 = vmatpush3.msk.msra.mxu1 %vm1215_vm1, %v1521_v52 }
 0x61e   :  { %2943 = vmatmul.mubr.msk.f32.vlgmr.msra.gmra.mrb[2].mxu1 %vm1529_vm12, %v1495_v29  ;;  %3081 = vmatprep.subr.bf16.mxu1 %v3367_v10 }
 0x61f   :  { %3083 = vmatpush3.bf16.msra.mxu1 %v3082_v42  ;;  %2953 = vmatprep.mubr.msk.f32.mxu1 %vm3368_vm0, %v4112_v51  ;;  %v1741_v13 = vpop.permute.xlu1 %1740 }
 0x620   :  { %3084 = vmatprep.subr.bf16.mxu1 %v3367_v10 }
 0x623   :  { %3086 = vmatpush3.bf16.msra.mxu1 %v3085_v36  ;;  %v1759_v63 = vpop.permute.xlu1 %1758 }
 0x625   :  { %v1500_v9 = vpop.permute.xlu0 %1499 }
 0x627   :  { %v1696_v59 = vpop.permute.xlu1 %1695 }
 0x628   :  { %v1698_v27 = vmul.f32 %v4112_v51, %v1696_v59 }
 0x629   :  { %v1726_v60 = vpop.permute.xlu0 %1725 }
 0x62a   :  { %v1728_v14 = vmul.f32 %v4112_v51, %v1726_v60 }
 0x62d   :  { %v1750_v44 = vpop.permute.xlu0 %1749 }
 0x631   :  { %v1768_v1 = vpop.permute.xlu0 %1767 }
 0x6f1   :  { %v1601_v21 = vpop.f32.mrb[2].mxu1 }
 0x6f2   :  { %v1602_v54 = vadd.f32 %v1601_v21, %v1500_v9  ;;  %v2944_v34 = vpop.f32.mrb[3].mxu1  ;;  %v2418_v9 = vld [vmem:[%s4432_s17 + $0xcf] sm:$0xff] }
 0x6f3   :  { %v2515_v21 = vld [vmem:[%s4432_s17 + $0xef] sm:$0xff]  ;;  %v2031_v34 = vld [vmem:[%s4432_s17 + $0x47] sm:$0xff] }
 0x6f4   :  { %v1605_v45 = vmax.f32 %v1602_v54, 0.0  ;;  %v1809_v54 = vld [vmem:[%s4432_s17 + $0x27] sm:$0xff] }
 0x6f6   :  { %2954 = vmatmul.mubr.msk.f32.vlgmr.msra.gmra.mrb[4].mxu1 %vm1610_vm13, %v1605_v45  ;;  %v2128_v45 = vld [vmem:[%s4432_s17 + $0x67] sm:$0xff] }
 0x7c9   :  { %v1680_v11 = vpop.f32.mrb[4].mxu1 }
 0x7ca   :  { %1687 = vst.msk [vmem:[#allocation2 + $0x8] sm:$0xff] %vm1686_vm14, %v1680_v11  ;;  %v2955_v8 = vpop.f32.mrb[5].mxu1  ;;  %v2320_v11 = vld [vmem:[%s4432_s17 + $0xa7] sm:$0xff] }
 0x7cb   :  { %v2417_v8 = vld [vmem:[%s4432_s17 + $0xc7] sm:$0xff] }
 0x7d1   :  { %v1689_v61 = vld [vmem:[#allocation2 + $0x8] sm:$0xff] }
 0x7d2   :  { %v1719_v3 = vmul.f32 %v1716_v26, %v1689_v61  ;;  %v1709_v4 = vmul.f32 %v1706_v2, %v1689_v61  ;;  %v1729_v0 = vmul.f32 %v1726_v60, %v1689_v61  ;;  %v1734_v19 = vmul.f32 %v1733_v35, %v1689_v61  ;;  %v2223_v2 = vld [vmem:[%s4432_s17 + $0x87] sm:$0xff] }
 0x7d3   :  { %v1752_v48 = vmul.f32 %v1750_v44, %v1689_v61  ;;  %v1743_v58 = vmul.f32 %v1741_v13, %v1689_v61  ;;  %v1761_v31 = vmul.f32 %v1759_v63, %v1689_v61  ;;  %v1699_v57 = vmul.f32 %v1696_v59, %v1689_v61  ;;  %v2514_v26 = vld [vmem:[%s4432_s17 + $0xe7] sm:$0xff] }
 0x7d4   :  { %v3303_v46 = vpack.i.bf16 %v1719_v3, %v1718_v18  ;;  %v3298_v49 = vpack.i.bf16 %v1709_v4, %v1708_v15  ;;  %v3308_v7 = vpack.i.bf16 %v1729_v0, %v1728_v14  ;;  %v1770_v16 = vmul.f32 %v1768_v1, %v1689_v61  ;;  %v2610_v15 = vld [vmem:[%s4432_s17 + $0xfa] sm:$0x7] }
 0x7d5   :  { %v3313_v24 = vpack.i.bf16 %v1699_v57, %v1698_v27 }
 0x7d6   :  { %3304 = vrot.lane.b32.xlu1 %v3303_v46, %s4408_s3  ;;  %3299 = vrot.lane.b32.xlu0 %v3298_v49, %s4412_s8 }
 0x7da   :  { %1793 = vrot.lane.b32.xlu1 %v1734_v19, %s4431_s4  ;;  %3309 = vrot.lane.b32.xlu0 %v3308_v7, %s4408_s3 }
 0x7de   :  { %1799 = vrot.lane.b32.xlu1 %v1752_v48, %s3369_s29  ;;  %1796 = vrot.lane.b32.xlu0 %v1743_v58, %s3369_s29 }
 0x7e2   :  { %1805 = vrot.lane.b32.xlu1 %v1770_v16, %s3374_s16  ;;  %1802 = vrot.lane.b32.xlu0 %v1761_v31, %s3372_s9 }
 0x7e6   :  { %3314 = vrot.lane.b32.xlu0 %v3313_v24, %s3370_s5 }
 0x848   :  { %v3305_v39 = vpop.permute.xlu1 %3304  ;;  %v3300_v32 = vpop.permute.xlu0 %3299 }
 0x849   :  { %v3307_v38 = vunpack.i.h.bf16 %v3305_v39  ;;  %v3306_v33 = vunpack.i.l.bf16 %v3305_v39  ;;  %v3302_v5 = vunpack.i.h.bf16 %v3300_v32  ;;  %v3301_v17 = vunpack.i.l.bf16 %v3300_v32 }
 0x84b   :  { %v1784_v20 = vsel %vm165_vm8, %v3306_v33, %v3307_v38  ;;  %v1777_v22 = vsel %vm118_vm2, %v3301_v17, %v3302_v5  ;;  %vm1863_vm2 = vcmask 588800   ;;  %v1808_v33 = vld [vmem:[%s4433_s12 + $0x8] sm:$0xff] }
 0x84c   :  { %v3323_v43 = vpack.i.bf16 %v3307_v38, %v1784_v20  ;;  %v3318_v37 = vpack.i.bf16 %v3302_v5, %v1777_v22  ;;  %v1794_v55 = vpop.permute.xlu1 %1793  ;;  %v3310_v23 = vpop.permute.xlu0 %3309  ;;  %2974 = vmatprep.mubr.msk.f32.mxu0 %vm1863_vm2, %v1807_v12  ;;  %v1947_v5 = vld [vmem:[%s4432_s17 + $0x11d] sm:$0xff] }
 0x84d   :  { %v3312_v29 = vunpack.i.h.bf16 %v3310_v23  ;;  %v3311_v42 = vunpack.i.l.bf16 %v3310_v23  ;;  %2977 = vmatprep.subr.mxu1 %v1947_v5 }
 0x84e   :  { %3319 = vrot.lane.b32.xlu1 %v3318_v37, %s3370_s5  ;;  %3324 = vrot.lane.b32.xlu0 %v3323_v43, %s3370_s5 }
 0x84f   :  { %v1791_v52 = vsel %vm165_vm8, %v3311_v42, %v3312_v29  ;;  %vm1849_vm8 = vcmask 23552   ;;  %2978 = vmatpush3.msra.mxu1 %v1947_v5  ;;  %v2029_v42 = vld [vmem:[%s4432_s17 + $0x37] sm:$0xff] }
 0x850   :  { %v3328_v30 = vpack.i.bf16 %v3312_v29, %v1791_v52  ;;  %v1800_v41 = vpop.permute.xlu1 %1799  ;;  %v1797_v36 = vpop.permute.xlu0 %1796 }
 0x851   :  { %v3333_v50 = vpack.i.bf16 %v1797_v36, %v1794_v55  ;;  %v2030_v36 = vld [vmem:[%s4432_s17 + $0x3f] sm:$0xff] }
 0x852   :  { %3329 = vrot.lane.b32.xlu1 %v3328_v30, %s3370_s5 }
 0x853   :  { %3334 = vrot.lane.b32.xlu0 %v3333_v50, %s3370_s5  ;;  %v2126_v50 = vld [vmem:[%s4432_s17 + $0x57] sm:$0xff] }
 0x854   :  { %v1803_v47 = vpop.permute.xlu0 %1802  ;;  %v1806_v56 = vpop.permute.xlu1 %1805 }
 0x855   :  { %v3338_v6 = vpack.i.bf16 %v1803_v47, %v1800_v41 }
 0x857   :  { %3339 = vrot.lane.b32.xlu1 %v3338_v6, %s3370_s5  ;;  %1847 = vrot.lane.b32.xlu0 %v1806_v56, %s3370_s5 }
 0x858   :  { %v3315_v18 = vpop.permute.xlu0 %3314 }
 0x859   :  { %v3317_v61 = vunpack.i.h.bf16 %v3315_v18  ;;  %v3316_v13 = vunpack.i.l.bf16 %v3315_v18  ;;  %v2318_v18 = vld [vmem:[%s4432_s17 + $0x97] sm:$0xff] }
 0x85b   :  { %1818 = vperm.xlu0 %3297, %v1810_v62   ;;  %1813 = vperm.xlu1 %3343, %v1809_v54   ;;  %v1850_v35 = vsel %vm1849_vm8, %v3316_v13, %v3317_v61 }
 0x85f   :  { %2040 = vperm.xlu0 %3297, %v2032_v53   ;;  %2035 = vperm.xlu1 %3343, %v2031_v34  }
 0x863   :  { %2137 = vperm.xlu0 %3297, %v2129_v28   ;;  %2132 = vperm.xlu1 %3343, %v2128_v45  }
 0x867   :  { %2232 = vperm.xlu0 %3297, %v2224_v40   ;;  %2227 = vperm.xlu1 %3343, %v2223_v2  }
 0x86b   :  { %2329 = vperm.xlu0 %3297, %v2321_v25   ;;  %2324 = vperm.xlu1 %3343, %v2320_v11  }
 0x86f   :  { %2426 = vperm.xlu0 %3297, %v2418_v9   ;;  %2421 = vperm.xlu1 %3343, %v2417_v8   ;;  %v2127_v9 = vld [vmem:[%s4432_s17 + $0x5f] sm:$0xff] }
 0x873   :  { %2523 = vperm.xlu0 %3297, %v2515_v21   ;;  %2518 = vperm.xlu1 %3343, %v2514_v26   ;;  %v2221_v21 = vld [vmem:[%s4432_s17 + $0x77] sm:$0xff] }
 0x877   :  { %2613 = vperm.xlu1 %3343, %v2610_v15   ;;  %v2222_v15 = vld [vmem:[%s4432_s17 + $0x7f] sm:$0xff] }
 0x8c0   :  { %v3320_v60 = vpop.permute.xlu1 %3319  ;;  %v3325_v3 = vpop.permute.xlu0 %3324 }
 0x8c1   :  { %v3322_v4 = vunpack.i.h.bf16 %v3320_v60  ;;  %v3321_v14 = vunpack.i.l.bf16 %v3320_v60  ;;  %v3327_v46 = vunpack.i.h.bf16 %v3325_v3  ;;  %v3326_v49 = vunpack.i.l.bf16 %v3325_v3 }
 0x8c3   :  { %v1851_v0 = vsel %vm1849_vm8, %v3321_v14, %v3322_v4  ;;  %v1852_v1 = vsel %vm1849_vm8, %v3326_v49, %v3327_v46 }
 0x8c4   :  { %v3330_v63 = vpop.permute.xlu1 %3329  ;;  %v3087_v44 = vpack.c.bf16 %v1851_v0, %v1850_v35  ;;  %v2319_v0 = vld [vmem:[%s4432_s17 + $0x9f] sm:$0xff] }
 0x8c5   :  { %v3332_v19 = vunpack.i.h.bf16 %v3330_v63  ;;  %v3331_v7 = vunpack.i.l.bf16 %v3330_v63  ;;  %v3335_v48 = vpop.permute.xlu0 %3334  ;;  %v2415_v63 = vld [vmem:[%s4432_s17 + $0xb7] sm:$0xff] }
 0x8c6   :  { %v3337_v58 = vunpack.i.h.bf16 %v3335_v48  ;;  %v3336_v59 = vunpack.i.l.bf16 %v3335_v48  ;;  %3088 = vmatprep.subr.bf16.mxu0 %v3087_v44 }
 0x8c7   :  { %3090 = vmatpush3.bf16.msra.mxu0 %v3087_v44  ;;  %v1853_v31 = vsel %vm1849_vm8, %v3331_v7, %v3332_v19 }
 0x8c8   :  { %v3091_v27 = vpack.c.bf16 %v1853_v31, %v1852_v1  ;;  %v3095_v16 = vpack.c.bf16 %v3337_v58, %v3336_v59 }
 0x8c9   :  { %v3340_v57 = vpop.permute.xlu1 %3339  ;;  %v1848_v38 = vpop.permute.xlu0 %1847 }
 0x8ca   :  { %v3342_v24 = vunpack.i.h.bf16 %v3340_v57  ;;  %v3341_v39 = vunpack.i.l.bf16 %v3340_v57  ;;  %3092 = vmatprep.subr.bf16.mxu0 %v3091_v27  ;;  %v2416_v57 = vld [vmem:[%s4432_s17 + $0xbf] sm:$0xff] }
 0x8cb   :  { %3094 = vmatpush3.bf16.msra.mxu0 %v3091_v27 }
 0x8cc   :  { %3096 = vmatprep.subr.bf16.mxu0 %v3095_v16  ;;  %v3099_v32 = vpack.c.bf16 %v3342_v24, %v3341_v39 }
 0x8cf   :  { %3098 = vmatpush3.bf16.msra.mxu0 %v3095_v16  ;;  %v2512_v16 = vld [vmem:[%s4432_s17 + $0xd7] sm:$0xff] }
 0x8d0   :  { %3100 = vmatprep.subr.bf16.mxu0 %v3099_v32 }
 0x8d3   :  { %3102 = vmatpush3.bf16.msra.mxu0 %v3099_v32 }
 0x8d4   :  { %2972 = vmatprep.subr.mxu0 %v1848_v38 }
 0x8d7   :  { %2973 = vmatpush3.msra.mxu0 %v1848_v38 }
 0x8d8   :  { %2975 = vmatmul.mubr.msk.f32.vlgmr.msra.gmra.mrb[2].mxu0 %vm1863_vm2, %v1808_v33 }
 0x8d9   :  { %3007 = vmatprep.mubr.msk.f32.mxu0 %vm359_vm5, %v2318_v18 }
 0x8da   :  { %v1819_v17 = vpop.permute.xlu0 %1818  ;;  %v1814_v22 = vpop.permute.xlu1 %1813 }
 0x8de   :  { %v2041_v47 = vpop.permute.xlu0 %2040  ;;  %v2036_v56 = vpop.permute.xlu1 %2035 }
 0x8e2   :  { %v2138_v54 = vpop.permute.xlu0 %2137  ;;  %v2133_v45 = vpop.permute.xlu1 %2132 }
 0x8e6   :  { %v2233_v61 = vpop.permute.xlu0 %2232  ;;  %v2228_v60 = vpop.permute.xlu1 %2227 }
 0x8ea   :  { %v2330_v44 = vpop.permute.xlu0 %2329  ;;  %v2325_v7 = vpop.permute.xlu1 %2324 }
 0x8ee   :  { %v2427_v24 = vpop.permute.xlu0 %2426  ;;  %v2422_v32 = vpop.permute.xlu1 %2421 }
 0x9ab   :  { %v2976_v20 = vpop.f32.mrb[2].mxu0 }
 0x9ac   :  { %v1942_v43 = vadd.f32 %v2976_v20, %v1819_v17  ;;  %v1936_v37 = vpop.f32.mrb[3].mxu0 }
 0x9ad   :  { %v1937_v55 = vadd.f32 %v1936_v37, %v1814_v22  ;;  %v2524_v22 = vpop.permute.xlu0 %2523  ;;  %v2519_v37 = vpop.permute.xlu1 %2518 }
 0x9ae   :  { %v1946_v29 = vmax.f32 %v1942_v43, 0.0 }
 0x9af   :  { %v1945_v23 = vmax.f32 %v1937_v55, 0.0 }
 0x9b1   :  { %2979 = vmatprep.mubr.msk.f32.mxu1 %vm1686_vm14, %v1945_v23 }
 0x9b2   :  { %2980 = vmatmul.mubr.msk.f32.vlgmr.msra.gmra.mrb[6].mxu1 %vm1686_vm14, %v1946_v29 }
 0x9b3   :  { %2986 = vmatprep.mubr.msk.f32.mxu1 %vm359_vm5, %v2029_v42 }
 0xa85   :  { %v2981_v52 = vpop.f32.mrb[6].mxu1 }
 0xa86   :  { %v2020_v30 = vpop.f32.mrb[7].mxu1 }
 0xa87   :  { %v3103_v41 = vpack.c.bf16 %v2981_v52, %v2020_v30 }
 0xa89   :  { %3104 = vmatprep.subr.bf16.mxu1 %v3103_v41 }
 0xa8a   :  { %3106 = vmatpush3.bf16.msra.mxu1 %v3103_v41  ;;  %v2609_v41 = vld [vmem:[%s4432_s17 + $0xf7] sm:$0x7] }
 0xa8d   :  { %2987 = vmatmul.mubr.msk.f32.vlgmr.msra.gmra.mrb[8].mxu1 %vm359_vm5, %v2030_v36  ;;  %v2614_v36 = vpop.permute.xlu1 %2613 }
 0xa8e   :  { %2993 = vmatprep.mubr.msk.f32.mxu1 %vm359_vm5, %v2126_v50 }
 0xb60   :  { %v2988_v6 = vpop.f32.mrb[8].mxu1 }
 0xb61   :  { %v2121_v62 = vadd.f32 %v2988_v6, %v2041_v47  ;;  %v2115_v12 = vpop.f32.mrb[9].mxu1 }
 0xb62   :  { %v2116_v53 = vadd.f32 %v2115_v12, %v2036_v56 }
 0xb63   :  { %v2125_v28 = vmax.f32 %v2121_v62, 0.0 }
 0xb64   :  { %v2124_v40 = vmax.f32 %v2116_v53, 0.0 }
 0xb66   :  { %v3107_v25 = vpack.c.bf16 %v2125_v28, %v2124_v40 }
 0xb68   :  { %3108 = vmatprep.subr.bf16.mxu1 %v3107_v25 }
 0xb69   :  { %3110 = vmatpush3.bf16.msra.mxu1 %v3107_v25 }
 0xb6c   :  { %2994 = vmatmul.mubr.msk.f32.vlgmr.msra.gmra.mrb[10].mxu1 %vm359_vm5, %v2127_v9 }
 0xb6d   :  { %3000 = vmatprep.mubr.msk.f32.mxu1 %vm359_vm5, %v2221_v21 }
 0xc3f   :  { %v2995_v34 = vpop.f32.mrb[10].mxu1 }
 0xc40   :  { %v2218_v2 = vadd.f32 %v2995_v34, %v2138_v54  ;;  %v2212_v11 = vpop.f32.mrb[11].mxu1 }
 0xc41   :  { %v2213_v8 = vadd.f32 %v2212_v11, %v2133_v45 }
 0xc43   :  { %v3111_v26 = vpack.c.bf16 %v2218_v2, %v2213_v8 }
 0xc45   :  { %3112 = vmatprep.subr.bf16.mxu1 %v3111_v26 }
 0xc46   :  { %3114 = vmatpush3.bf16.msra.mxu1 %v3111_v26 }
 0xc49   :  { %3001 = vmatmul.mubr.msk.f32.vlgmr.msra.gmra.mrb[12].mxu1 %vm359_vm5, %v2222_v15 }
 0xc4a   :  { %3014 = vmatprep.mubr.msk.f32.mxu1 %vm359_vm5, %v2415_v63 }
 0xd1c   :  { %v3002_v13 = vpop.f32.mrb[12].mxu1 }
 0xd1d   :  { %v2313_v3 = vadd.f32 %v3002_v13, %v2233_v61  ;;  %v2307_v4 = vpop.f32.mrb[13].mxu1 }
 0xd1e   :  { %v2308_v14 = vadd.f32 %v2307_v4, %v2228_v60 }
 0xd1f   :  { %v2317_v46 = vmax.f32 %v2313_v3, 0.0 }
 0xd20   :  { %v2316_v49 = vmax.f32 %v2308_v14, 0.0 }
 0xd22   :  { %v3115_v35 = vpack.c.bf16 %v2317_v46, %v2316_v49 }
 0xd24   :  { %3116 = vmatprep.subr.bf16.mxu0 %v3115_v35 }
 0xd25   :  { %3118 = vmatpush3.bf16.msra.mxu0 %v3115_v35 }
 0xd28   :  { %3008 = vmatmul.mubr.msk.f32.vlgmr.msra.gmra.mrb[4].mxu0 %vm359_vm5, %v2319_v0 }
 0xd29   :  { %3021 = vmatprep.mubr.msk.f32.mxu0 %vm359_vm5, %v2512_v16 }
 0xdfb   :  { %v3009_v19 = vpop.f32.mrb[4].mxu0 }
 0xdfc   :  { %v2410_v48 = vadd.f32 %v3009_v19, %v2330_v44  ;;  %v2404_v58 = vpop.f32.mrb[5].mxu0 }
 0xdfd   :  { %v2405_v59 = vadd.f32 %v2404_v58, %v2325_v7 }
 0xdfe   :  { %v2414_v1 = vmax.f32 %v2410_v48, 0.0 }
 0xdff   :  { %v2413_v31 = vmax.f32 %v2405_v59, 0.0 }
 0xe01   :  { %v3119_v27 = vpack.c.bf16 %v2414_v1, %v2413_v31 }
 0xe03   :  { %3120 = vmatprep.subr.bf16.mxu1 %v3119_v27 }
 0xe04   :  { %3122 = vmatpush3.bf16.msra.mxu1 %v3119_v27 }
 0xe05   :  { %3127 = vmatprep.subr.bf16.mxu1 %v3367_v10 }
 0xe07   :  { %3015 = vmatmul.mubr.msk.f32.vlgmr.msra.gmra.mrb[14].mxu1 %vm359_vm5, %v2416_v57 }
 0xe08   :  { %3028 = vmatprep.mubr.msk.f32.mxu1 %vm3368_vm0, %v4112_v51  ;;  %v2513_v51 = vld [vmem:[%s4432_s17 + $0xdf] sm:$0xff] }
 0xeda   :  { %v3016_v39 = vpop.f32.mrb[14].mxu1 }
 0xedb   :  { %v2507_v38 = vadd.f32 %v3016_v39, %v2427_v24  ;;  %v2501_v33 = vpop.f32.mrb[15].mxu1 }
 0xedc   :  { %v2502_v5 = vadd.f32 %v2501_v33, %v2422_v32 }
 0xedd   :  { %v2511_v17 = vmax.f32 %v2507_v38, 0.0 }
 0xede   :  { %v2510_v20 = vmax.f32 %v2502_v5, 0.0 }
 0xee0   :  { %v3123_v10 = vpack.c.bf16 %v2511_v17, %v2510_v20 }
 0xee2   :  { %3124 = vmatprep.subr.bf16.mxu0 %v3123_v10 }
 0xee3   :  { %3126 = vmatpush3.bf16.msra.mxu0 %v3123_v10 }
 0xee6   :  { %3022 = vmatmul.mubr.msk.f32.vlgmr.msra.gmra.mrb[6].mxu0 %vm359_vm5, %v2513_v51 }
 0xfb9   :  { %v3023_v43 = vpop.f32.mrb[6].mxu0 }
 0xfba   :  { %v2604_v55 = vadd.f32 %v3023_v43, %v2524_v22  ;;  %v2598_v23 = vpop.f32.mrb[7].mxu0 }
 0xfbb   :  { %v2599_v29 = vadd.f32 %v2598_v23, %v2519_v37 }
 0xfbc   :  { %v2608_v42 = vmax.f32 %v2604_v55, 0.0 }
 0xfbd   :  { %v2607_v52 = vmax.f32 %v2599_v29, 0.0 }
 0xfbf   :  { %v3128_v30 = vpack.c.bf16 %v2608_v42, %v2607_v52 }
 0xfc1   :  { %3129 = vmatpush3.bf16.msra.mxu1 %v3128_v30 }
 0xfc4   :  { %3029 = vmatmul.mubr.msk.f32.vlgmr.msra.gmra.mrb[16].mxu1 %vm359_vm5, %v2609_v41 }
0x1097   :  { %v2685_v50 = vpop.f32.mrb[16].mxu1 }
0x1098   :  { %v2686_v47 = vadd.f32 %v2685_v50, %v2614_v36  ;;  %v3030_v6 = vpop.f32.mrb[17].mxu1 }
0x109a   :  { %2690 = vst.msk [vmem:[%s4434_s25] sm:$0x7] %vm2689_vm15, %v2686_v47 }

</bundles_post_ra>
